<compile_context>
chip_gen: v7x
topology: tpu7x:2x2x1
jax: 0.10.0
libtpu: 0.0.40
codegen_flags: <defaults>
</compile_context>

<pallas_src>
import jax
import jax.numpy as jnp
from jax.experimental import pallas as pl
from jax.experimental.pallas import tpu as pltpu

IN = 784                         # flattened 28*28 input
H1, H2, C = 200, 80, 10          # logical layer widths (PyTorch module)
H1P, H2P, CP = 256, 128, 128     # lane-aligned padded widths used by the kernel


def _leaky_relu(x, negative_slope=0.01):
    # Matches torch.nn.functional.leaky_relu_ default negative_slope=0.01
    return jnp.where(x > 0, x, negative_slope * x)


def mnist_kernel(x_ref, w1_ref, b1_ref, w2_ref, b2_ref, w3_ref, b3_ref, o_ref):
    # x arrives in native f32; cast to bf16 on-chip for the MXU (VPU cast is free,
    # avoids a separate wrapper-side bf16 copy of x through HBM).
    x = x_ref[...].astype(jnp.bfloat16)                       # (TB, 784)

    # d1: 784 -> 256 (200 real + zero pad), bf16 MXU, f32 accumulate
    h1 = jnp.dot(x, w1_ref[...], preferred_element_type=jnp.float32) + b1_ref[...]
    h1 = _leaky_relu(h1)                                      # padded cols stay exactly 0

    # d2: 256 -> 128 (80 real + zero pad)
    h2 = jnp.dot(h1.astype(jnp.bfloat16), w2_ref[...],
                 preferred_element_type=jnp.float32) + b2_ref[...]
    h2 = _leaky_relu(h2)

    # d3: 128 -> 128 (10 real + pad); padded cols get -1e30 bias -> exp() == 0
    logits = jnp.dot(h2.astype(jnp.bfloat16), w3_ref[...],
                     preferred_element_type=jnp.float32) + b3_ref[...]

    # numerically-stable softmax over the (padded) class axis, all in f32
    m = jnp.max(logits, axis=-1, keepdims=True)
    e = jnp.exp(logits - m)
    denom = jnp.sum(e, axis=-1, keepdims=True)
    # exact reciprocal (still EUP, cheap); approx=True was not accurate enough
    probs = e * pl.reciprocal(denom, approx=False)
    o_ref[...] = probs.astype(o_ref.dtype)                    # (TB, 128) lane-dense bf16 store


def _choose_tile(B, max_tb=512):
    """Tile = multiple of 128, capped at max_tb, with >=2 grid steps when B allows
    (so the 'parallel' batch axis can shard across v7x's two TensorCores)."""
    half = -(-B // 2)
    tb = max(128, ((half + 127) // 128) * 128)
    return min(max_tb, tb)


def mnist_forward(x, padded_params, *, max_tb=512):
    """x: (B, 1, 28, 28) or (B, 784), any float dtype. Returns (B, 10) softmax probs (bf16)."""
    w1, b1, w2, b2, w3, b3 = padded_params
    B = x.shape[0]
    x2d = x.reshape(B, -1)                       # Flatten; keep native dtype (cast on-chip)
    assert x2d.shape[1] == IN

    tb = _choose_tile(B, max_tb)
    n_tiles = pl.cdiv(B, tb)
    b_pad = n_tiles * tb
    if b_pad != B:                               # only pad when B % tb != 0
        x2d = jnp.pad(x2d, ((0, b_pad - B), (0, 0)))

    const = lambda shape: pl.BlockSpec(shape, lambda i: (0, 0))  # VMEM-resident operands

    itemsize = int(x2d.dtype.itemsize)
    cost = pl.CostEstimate(
        flops=int(2 * b_pad * (IN * H1P + H1P * H2P + H2P * CP)),
        bytes_accessed=int(b_pad * (IN * itemsize + CP * 2)
                           + (IN * H1P + H1P * H2P + H2P * CP) * 2
                           + (H1P + H2P + CP) * 4),
        transcendentals=int(b_pad * CP),
    )

    out = pl.pallas_call(
        mnist_kernel,
        out_shape=jax.ShapeDtypeStruct((b_pad, CP), jnp.bfloat16),
        grid=(n_tiles,),
        in_specs=[
            pl.BlockSpec((tb, IN), lambda i: (i, 0)),    # x tile marches over batch
            const((IN, H1P)), const((1, H1P)),
            const((H1P, H2P)), const((1, H2P)),
            const((H2P, CP)), const((1, CP)),
        ],
        out_specs=pl.BlockSpec((tb, CP), lambda i: (i, 0)),
        compiler_params=pltpu.CompilerParams(
            dimension_semantics=("parallel",),           # v7x dual-TC sharding
        ),
        cost_estimate=cost,
    )(x2d, w1, b1, w2, b2, w3, b3)

    return out[:B, :C]                                   # drop batch/class padding


def init_params(key):
    """PyTorch-default init, weights stored as (in, out) so the kernel does x @ W."""
    ks = jax.random.split(key, 6)

    def linear(kw, kb, fan_in, fan_out):
        # nn.Linear default init: U(-1/sqrt(fan_in), 1/sqrt(fan_in))
        bound = 1.0 / jnp.sqrt(jnp.float32(fan_in))
        w = jax.random.uniform(kw, (fan_in, fan_out), jnp.float32, -bound, bound)
        b = jax.random.uniform(kb, (1, fan_out), jnp.float32, -bound, bound)
        return w, b

    w1, b1 = linear(ks[0], ks[1], IN, H1)
    w2, b2 = linear(ks[2], ks[3], H1, H2)
    w3, b3 = linear(ks[4], ks[5], H2, C)
    return (w1, b1, w2, b2, w3, b3)


def pad_params(params):
    """Zero-pad to lane-aligned widths; weights -> bf16, biases stay f32.
    Padded logit columns get a -1e30 bias so they vanish under softmax."""
    w1, b1, w2, b2, w3, b3 = params

    def pad_w(w, rows, cols):
        out = jnp.zeros((rows, cols), jnp.float32)
        out = out.at[: w.shape[0], : w.shape[1]].set(w)
        return out.astype(jnp.bfloat16)

    def pad_b(b, cols, fill=0.0):
        out = jnp.full((1, cols), fill, jnp.float32)
        return out.at[:, : b.shape[1]].set(b)

    return (
        pad_w(w1, IN, H1P),  pad_b(b1, H1P),
        pad_w(w2, H1P, H2P), pad_b(b2, H2P),
        pad_w(w3, H2P, CP),  pad_b(b3, CP, fill=-1e30),
    )


def mnist_reference(x, params):
    """Pure-JAX f32 reference matching the PyTorch forward."""
    w1, b1, w2, b2, w3, b3 = params
    x2d = x.reshape(x.shape[0], -1).astype(jnp.float32)
    h1 = jax.nn.leaky_relu(x2d @ w1 + b1, 0.01)
    h2 = jax.nn.leaky_relu(h1 @ w2 + b2, 0.01)
    return jax.nn.softmax(h2 @ w3 + b3, axis=-1)


if __name__ == "__main__":
    key = jax.random.PRNGKey(0)
    k_x, k_p = jax.random.split(key)

    # Small deterministic example; kernel pads the ragged batch up to one 128-row tile.
    B = 4
    x = jax.random.normal(k_x, (B, 1, 28, 28), dtype=jnp.float32)
    params = init_params(k_p)
    padded = pad_params(params)

    out = mnist_forward(x, padded)
    out = jax.block_until_ready(out)

    assert out.shape == (B, 10)
    out_f32 = out.astype(jnp.float32)

    # softmax rows sum to 1 (exact reciprocal; slack only for bf16 output rounding)
    row_sums = jnp.sum(out_f32, axis=-1)
    assert bool(jnp.allclose(row_sums, 1.0, atol=1e-2)), row_sums

    # matches the f32 reference up to bf16 matmul/output error
    ref = mnist_reference(x, params)
    assert bool(jnp.allclose(out_f32, ref, atol=3e-2)), float(jnp.max(jnp.abs(out_f32 - ref)))

    print("KERNEL_OK")
</pallas_src>

<mosaic_0001>
module attributes {stable_mosaic.version = 11 : i64} {
  func.func @mnist_kernel(%arg0: i32, %arg1: memref<128x784xf32, #tpu.memory_space<vmem>>, %arg2: memref<784x256xbf16, #tpu.memory_space<vmem>>, %arg3: memref<1x256xf32, #tpu.memory_space<vmem>>, %arg4: memref<256x128xbf16, #tpu.memory_space<vmem>>, %arg5: memref<1x128xf32, #tpu.memory_space<vmem>>, %arg6: memref<128x128xbf16, #tpu.memory_space<vmem>>, %arg7: memref<1x128xf32, #tpu.memory_space<vmem>>, %arg8: memref<128x128xbf16, #tpu.memory_space<vmem>>) attributes {dimension_semantics = [#tpu.dimension_semantics<parallel>], iteration_bounds = array<i64: 1>, scalar_prefetch = 0 : i64, scratch_operands = 0 : i64, tpu.core_type = #tpu.core_type<tc>, window_params = [{transform_indices = @transform_0, window_bounds = array<i64: 128, 784>}, {pipeline_mode = #tpu.pipeline_mode<synchronous>, transform_indices = @transform_1, window_bounds = array<i64: 784, 256>}, {pipeline_mode = #tpu.pipeline_mode<synchronous>, transform_indices = @transform_2, window_bounds = array<i64: 1, 256>}, {pipeline_mode = #tpu.pipeline_mode<synchronous>, transform_indices = @transform_3, window_bounds = array<i64: 256, 128>}, {pipeline_mode = #tpu.pipeline_mode<synchronous>, transform_indices = @transform_4, window_bounds = array<i64: 1, 128>}, {pipeline_mode = #tpu.pipeline_mode<synchronous>, transform_indices = @transform_5, window_bounds = array<i64: 128, 128>}, {pipeline_mode = #tpu.pipeline_mode<synchronous>, transform_indices = @transform_6, window_bounds = array<i64: 1, 128>}, {transform_indices = @transform_7, window_bounds = array<i64: 128, 128>}]} {
    %c0 = arith.constant 0 : index
    %c0_0 = arith.constant 0 : index
    %0 = vector.load %arg1[%c0, %c0_0] : memref<128x784xf32, #tpu.memory_space<vmem>>, vector<128x784xf32>
    %1 = arith.truncf %0 : vector<128x784xf32> to vector<128x784xbf16>
    %c0_1 = arith.constant 0 : index
    %c0_2 = arith.constant 0 : index
    %2 = vector.load %arg2[%c0_1, %c0_2] : memref<784x256xbf16, #tpu.memory_space<vmem>>, vector<784x256xbf16>
    %cst = arith.constant dense<0.000000e+00> : vector<128x256xf32>
    %3 = tpu.matmul %1, %2, %cst {dimension_numbers = #tpu.dot_dimension_numbers<[1], [0], [0], [1], [0, 0, 1, 1], [], []>} : vector<128x784xbf16>, vector<784x256xbf16>, vector<128x256xf32> -> vector<128x256xf32>
    %c0_3 = arith.constant 0 : index
    %c0_4 = arith.constant 0 : index
    %4 = vector.load %arg3[%c0_3, %c0_4] : memref<1x256xf32, #tpu.memory_space<vmem>>, vector<1x256xf32>
    %5 = vector.broadcast %4 : vector<1x256xf32> to vector<128x256xf32>
    %6 = arith.addf %3, %5 : vector<128x256xf32>
    %cst_5 = arith.constant 0.000000e+00 : f32
    %7 = vector.broadcast %cst_5 : f32 to vector<128x256xf32>
    %8 = arith.cmpf ogt, %6, %7 : vector<128x256xf32>
    %cst_6 = arith.constant 0.00999999977 : f32
    %9 = vector.broadcast %cst_6 : f32 to vector<128x256xf32>
    %10 = arith.mulf %9, %6 : vector<128x256xf32>
    %11 = arith.select %8, %6, %10 : vector<128x256xi1>, vector<128x256xf32>
    %12 = arith.truncf %11 : vector<128x256xf32> to vector<128x256xbf16>
    %c0_7 = arith.constant 0 : index
    %c0_8 = arith.constant 0 : index
    %13 = vector.load %arg4[%c0_7, %c0_8] : memref<256x128xbf16, #tpu.memory_space<vmem>>, vector<256x128xbf16>
    %cst_9 = arith.constant dense<0.000000e+00> : vector<128x128xf32>
    %14 = tpu.matmul %12, %13, %cst_9 {dimension_numbers = #tpu.dot_dimension_numbers<[1], [0], [0], [1], [0, 0, 1, 1], [], []>} : vector<128x256xbf16>, vector<256x128xbf16>, vector<128x128xf32> -> vector<128x128xf32>
    %c0_10 = arith.constant 0 : index
    %c0_11 = arith.constant 0 : index
    %15 = vector.load %arg5[%c0_10, %c0_11] : memref<1x128xf32, #tpu.memory_space<vmem>>, vector<1x128xf32>
    %16 = vector.broadcast %15 : vector<1x128xf32> to vector<128x128xf32>
    %17 = arith.addf %14, %16 : vector<128x128xf32>
    %cst_12 = arith.constant 0.000000e+00 : f32
    %18 = vector.broadcast %cst_12 : f32 to vector<128x128xf32>
    %19 = arith.cmpf ogt, %17, %18 : vector<128x128xf32>
    %cst_13 = arith.constant 0.00999999977 : f32
    %20 = vector.broadcast %cst_13 : f32 to vector<128x128xf32>
    %21 = arith.mulf %20, %17 : vector<128x128xf32>
    %22 = arith.select %19, %17, %21 : vector<128x128xi1>, vector<128x128xf32>
    %23 = arith.truncf %22 : vector<128x128xf32> to vector<128x128xbf16>
    %c0_14 = arith.constant 0 : index
    %c0_15 = arith.constant 0 : index
    %24 = vector.load %arg6[%c0_14, %c0_15] : memref<128x128xbf16, #tpu.memory_space<vmem>>, vector<128x128xbf16>
    %cst_16 = arith.constant dense<0.000000e+00> : vector<128x128xf32>
    %25 = tpu.matmul %23, %24, %cst_16 {dimension_numbers = #tpu.dot_dimension_numbers<[1], [0], [0], [1], [0, 0, 1, 1], [], []>} : vector<128x128xbf16>, vector<128x128xbf16>, vector<128x128xf32> -> vector<128x128xf32>
    %c0_17 = arith.constant 0 : index
    %c0_18 = arith.constant 0 : index
    %26 = vector.load %arg7[%c0_17, %c0_18] : memref<1x128xf32, #tpu.memory_space<vmem>>, vector<1x128xf32>
    %27 = vector.broadcast %26 : vector<1x128xf32> to vector<128x128xf32>
    %28 = arith.addf %25, %27 : vector<128x128xf32>
    %cst_19 = arith.constant dense<0xFF800000> : vector<128xf32>
    %29 = vector.multi_reduction <maximumf>, %28, %cst_19 [1] : vector<128x128xf32> to vector<128xf32>
    %30 = vector.shape_cast %29 : vector<128xf32> to vector<128x1xf32>
    %31 = vector.broadcast %30 : vector<128x1xf32> to vector<128x128xf32>
    %32 = arith.subf %28, %31 : vector<128x128xf32>
    %33 = math.exp %32 : vector<128x128xf32>
    %cst_20 = arith.constant dense<0.000000e+00> : vector<128xf32>
    %34 = vector.multi_reduction <add>, %33, %cst_20 [1] : vector<128x128xf32> to vector<128xf32>
    %35 = vector.shape_cast %34 : vector<128xf32> to vector<128x1xf32>
    %36 = tpu.reciprocal %35 : vector<128x1xf32> -> vector<128x1xf32>
    %37 = vector.broadcast %36 : vector<128x1xf32> to vector<128x128xf32>
    %38 = arith.mulf %33, %37 : vector<128x128xf32>
    %39 = arith.truncf %38 : vector<128x128xf32> to vector<128x128xbf16>
    %c0_21 = arith.constant 0 : index
    %c0_22 = arith.constant 0 : index
    %40 = vector.load %arg8[%c0_21, %c0_22] : memref<128x128xbf16, #tpu.memory_space<vmem>>, vector<128x128xbf16>
    tpu.vector_store %arg8[%c0_21, %c0_22], %39 {strides = array<i32>} : memref<128x128xbf16, #tpu.memory_space<vmem>>, vector<128x128xbf16>,
    return
  }
  func.func @transform_0(%arg0: i32) -> (i32, i32) {
    %c0_i32 = arith.constant 0 : i32
    %c0_i32_0 = arith.constant 0 : i32
    return %arg0, %c0_i32 : i32, i32
  }
  func.func @transform_1(%arg0: i32) -> (i32, i32) {
    %c0_i32 = arith.constant 0 : i32
    %c0_i32_0 = arith.constant 0 : i32
    %c0_i32_1 = arith.constant 0 : i32
    return %c0_i32, %c0_i32_0 : i32, i32
  }
  func.func @transform_2(%arg0: i32) -> (i32, i32) {
    %c0_i32 = arith.constant 0 : i32
    %c0_i32_0 = arith.constant 0 : i32
    %c0_i32_1 = arith.constant 0 : i32
    return %c0_i32, %c0_i32_0 : i32, i32
  }
  func.func @transform_3(%arg0: i32) -> (i32, i32) {
    %c0_i32 = arith.constant 0 : i32
    %c0_i32_0 = arith.constant 0 : i32
    %c0_i32_1 = arith.constant 0 : i32
    return %c0_i32, %c0_i32_0 : i32, i32
  }
  func.func @transform_4(%arg0: i32) -> (i32, i32) {
    %c0_i32 = arith.constant 0 : i32
    %c0_i32_0 = arith.constant 0 : i32
    %c0_i32_1 = arith.constant 0 : i32
    return %c0_i32, %c0_i32_0 : i32, i32
  }
  func.func @transform_5(%arg0: i32) -> (i32, i32) {
    %c0_i32 = arith.constant 0 : i32
    %c0_i32_0 = arith.constant 0 : i32
    %c0_i32_1 = arith.constant 0 : i32
    return %c0_i32, %c0_i32_0 : i32, i32
  }
  func.func @transform_6(%arg0: i32) -> (i32, i32) {
    %c0_i32 = arith.constant 0 : i32
    %c0_i32_0 = arith.constant 0 : i32
    %c0_i32_1 = arith.constant 0 : i32
    return %c0_i32, %c0_i32_0 : i32, i32
  }
  func.func @transform_7(%arg0: i32) -> (i32, i32) {
    %c0_i32 = arith.constant 0 : i32
    %c0_i32_0 = arith.constant 0 : i32
    return %arg0, %c0_i32 : i32, i32
  }
}

</mosaic_0001>

<bundles_post_ra>
// kernel: tpu_custom_call.1
= control target key start
LH: loop header
LB: loop body
LE: loop exit
PB: predicated region body
PF: predicated region fallthrough
CT: control target
= control target key end

     0   :  { %s3810_s0 = inlined_call_operand.vmem [shape: f32[128,784], index: 0, kind: input, shape index: {}]   ;;  %s3811_s1 = inlined_call_operand.vmem [shape: bf16[784,256], index: 1, kind: input, shape index: {}]   ;;  %s3812_s2 = inlined_call_operand.vmem [shape: f32[1,256], index: 2, kind: input, shape index: {}]   ;;  %s3813_s3 = inlined_call_operand.vmem [shape: bf16[256,128], index: 3, kind: input, shape index: {}]   ;;  %s3814_s4 = inlined_call_operand.vmem [shape: f32[1,128], index: 4, kind: input, shape index: {}]   ;;  %s3815_s5 = inlined_call_operand.vmem [shape: bf16[128,128], index: 5, kind: input, shape index: {}]   ;;  %s3816_s6 = inlined_call_operand.vmem [shape: f32[1,128], index: 6, kind: input, shape index: {}]   ;;  %s3817_s7 = inlined_call_operand.hbm [shape: bf16[128,128], index: 7, kind: output, shape index: {}]  }
   0x1   :  { %v2536_v0 = vld [vmem:[%s3811_s1 + $0x104] ss:$8 sps:$4 sm:$0xff]   ;;  %v2538_v1 = vld [vmem:[%s3811_s1 + $0x100] ss:$8 sps:$4 sm:$0xff]   ;;  %v2539_v2 = vld [vmem:[%s3811_s1 + $0x114] ss:$8 sps:$4 sm:$0xff]  }
   0x2   :  { %934 = vmatprep.subr.bf16.mxu0 %v2536_v0  ;;  %v2541_v3 = vld [vmem:[%s3811_s1 + $0x110] ss:$8 sps:$4 sm:$0xff]   ;;  %v2542_v4 = vld [vmem:[%s3811_s1 + $0x124] ss:$8 sps:$4 sm:$0xff]   ;;  %v2544_v5 = vld [vmem:[%s3811_s1 + $0x120] ss:$8 sps:$4 sm:$0xff]  }
   0x3   :  { %935 = vmatpush1.bf16.msra.mxu0 %v2538_v1  ;;  %v2545_v6 = vld [vmem:[%s3811_s1 + $0x134] ss:$8 sps:$4 sm:$0xff]   ;;  %v2547_v7 = vld [vmem:[%s3811_s1 + $0x130] ss:$8 sps:$4 sm:$0xff]   ;;  %v2548_v8 = vld [vmem:[%s3811_s1 + $0x144] ss:$8 sps:$4 sm:$0xff]  }
   0x4   :  { %936 = vmatprep.subr.bf16.mxu0 %v2539_v2  ;;  %v2550_v9 = vld [vmem:[%s3811_s1 + $0x140] ss:$8 sps:$4 sm:$0xff]   ;;  %v2551_v10 = vld [vmem:[%s3811_s1 + $0x154] ss:$8 sps:$4 sm:$0xff]   ;;  %v2553_v11 = vld [vmem:[%s3811_s1 + $0x150] ss:$8 sps:$4 sm:$0xff]  }
   0x5   :  { %v2554_v12 = vld [vmem:[%s3811_s1 + $0x164] ss:$8 sps:$4 sm:$0xff]   ;;  %v31_v13 = vld [vmem:[%s3810_s0 + $0x18] sm:$0xff]  ;;  %v38_v14 = vld [vmem:[%s3810_s0 + $0x50] sm:$0xff] }
   0x6   :  { %v143_v15 = vpack.c.bf16 %v38_v14, %v31_v13  ;;  %v2556_v16 = vld [vmem:[%s3811_s1 + $0x160] ss:$8 sps:$4 sm:$0xff]   ;;  %v2557_v17 = vld [vmem:[%s3811_s1 + $0x174] ss:$8 sps:$4 sm:$0xff]   ;;  %v2559_v18 = vld [vmem:[%s3811_s1 + $0x170] ss:$8 sps:$4 sm:$0xff]  }
   0x7   :  { %937 = vmatpush1.bf16.msra.mxu0 %v2541_v3  ;;  %v2560_v19 = vld [vmem:[%s3811_s1 + $0x184] ss:$8 sps:$4 sm:$0xff]   ;;  %v2562_v20 = vld [vmem:[%s3811_s1 + $0x180] ss:$8 sps:$4 sm:$0xff]   ;;  %v2563_v21 = vld [vmem:[%s3811_s1 + $0x194] ss:$8 sps:$4 sm:$0xff]  }
   0x8   :  { %938 = vmatprep.subr.bf16.mxu0 %v2542_v4  ;;  %966 = vmatprep.mubr.bf16.mxu0 %v143_v15  ;;  %v2565_v22 = vld [vmem:[%s3811_s1 + $0x190] ss:$8 sps:$4 sm:$0xff]   ;;  %v2566_v23 = vld [vmem:[%s3811_s1 + $0x1a4] ss:$8 sps:$4 sm:$0xff]   ;;  %v2568_v24 = vld [vmem:[%s3811_s1 + $0x1a0] ss:$8 sps:$4 sm:$0xff]  }
   0x9   :  { %v2569_v25 = vld [vmem:[%s3811_s1 + $0x1b4] ss:$8 sps:$4 sm:$0xff]   ;;  %v2571_v26 = vld [vmem:[%s3811_s1 + $0x1b0] ss:$8 sps:$4 sm:$0xff]   ;;  %v2572_v27 = vld [vmem:[%s3811_s1 + $0x1c4] ss:$8 sps:$4 sm:$0xff]  }
   0xa   :  { %v2574_v28 = vld [vmem:[%s3811_s1 + $0x1c0] ss:$8 sps:$4 sm:$0xff]   ;;  %v2575_v29 = vld [vmem:[%s3811_s1 + $0x1d4] ss:$8 sps:$4 sm:$0xff]   ;;  %v2577_v30 = vld [vmem:[%s3811_s1 + $0x1d0] ss:$8 sps:$4 sm:$0xff]  }
   0xb   :  { %939 = vmatpush1.bf16.msra.mxu0 %v2544_v5  ;;  %v2578_v31 = vld [vmem:[%s3811_s1 + $0x1e4] ss:$8 sps:$4 sm:$0xff]   ;;  %v2634_v33 = vld [vmem:[%s3811_s1] ss:$8 sps:$4 sm:$0xff]   ;;  %v2581_v35 = vld [vmem:[%s3811_s1 + $0x1f4] ss:$8 sps:$4 sm:$0xff]  }
   0xc   :  { %940 = vmatprep.subr.bf16.mxu0 %v2545_v6  ;;  %v2629_v32 = vld [vmem:[%s3811_s1 + $0x4] ss:$8 sps:$4 sm:$0xff]   ;;  %v2580_v34 = vld [vmem:[%s3811_s1 + $0x1e0] ss:$8 sps:$4 sm:$0xff]   ;;  %v2635_v36 = vld [vmem:[%s3811_s1 + $0x14] ss:$8 sps:$4 sm:$0xff]  }
   0xd   :  { %821 = vmatprep.subr.bf16.mxu1 %v2629_v32  ;;  %v2583_v37 = vld [vmem:[%s3811_s1 + $0x1f0] ss:$8 sps:$4 sm:$0xff]   ;;  %v37_v39 = vld [vmem:[%s3810_s0 + $0x48] sm:$0xff]  ;;  %v52_v44 = vld [vmem:[%s3810_s0 + $0xc0] sm:$0xff] }
   0xe   :  { %822 = vmatpush1.bf16.msra.mxu1 %v2634_v33  ;;  %v30_v38 = vld [vmem:[%s3810_s0 + $0x10] sm:$0xff]  ;;  %v2586_v40 = vld [vmem:[%s3811_s1 + $0x204] ss:$8 sps:$4 sm:$0xff]   ;;  %v2643_v45 = vld [vmem:[%s3811_s1 + $0x20] ss:$8 sps:$4 sm:$0xff]  }
   0xf   :  { %941 = vmatpush1.bf16.msra.mxu0 %v2547_v7  ;;  %823 = vmatprep.subr.bf16.mxu1 %v2635_v36  ;;  %v2640_v41 = vld [vmem:[%s3811_s1 + $0x10] ss:$8 sps:$4 sm:$0xff]   ;;  %v45_v42 = vld [vmem:[%s3810_s0 + $0x88] sm:$0xff]  ;;  %v2644_v46 = vld [vmem:[%s3811_s1 + $0x34] ss:$8 sps:$4 sm:$0xff]   ;;  %v142_v47 = vpack.c.bf16 %v37_v39, %v30_v38 }
  0x10   :  { %942 = vmatprep.subr.bf16.mxu0 %v2548_v8  ;;  %v2641_v43 = vld [vmem:[%s3811_s1 + $0x24] ss:$8 sps:$4 sm:$0xff]   ;;  %v2584_v48 = vld [vmem:[%s3811_s1 + $0x200] ss:$8 sps:$4 sm:$0xff]   ;;  %v150_v49 = vpack.c.bf16 %v52_v44, %v45_v42  ;;  %v2589_v50 = vld [vmem:[%s3811_s1 + $0x214] ss:$8 sps:$4 sm:$0xff]  }
  0x11   :  { %v2646_v51 = vld [vmem:[%s3811_s1 + $0x30] ss:$8 sps:$4 sm:$0xff]   ;;  %v2647_v53 = vld [vmem:[%s3811_s1 + $0x44] ss:$8 sps:$4 sm:$0xff]   ;;  %v2649_v59 = vld [vmem:[%s3811_s1 + $0x40] ss:$8 sps:$4 sm:$0xff]  }
  0x12   :  { %824 = vmatpush1.bf16.msra.mxu1 %v2640_v41  ;;  %v2587_v52 = vld [vmem:[%s3811_s1 + $0x210] ss:$8 sps:$4 sm:$0xff]   ;;  %v44_v54 = vld [vmem:[%s3810_s0 + $0x80] sm:$0xff]  ;;  %v2650_v60 = vld [vmem:[%s3811_s1 + $0x54] ss:$8 sps:$4 sm:$0xff]  }
  0x13   :  { %943 = vmatpush1.bf16.msra.mxu0 %v2550_v9  ;;  %825 = vmatprep.subr.bf16.mxu1 %v2641_v43  ;;  %v51_v55 = vld [vmem:[%s3810_s0 + $0xb8] sm:$0xff]  ;;  %v2592_v56 = vld [vmem:[%s3811_s1 + $0x224] ss:$8 sps:$4 sm:$0xff]   ;;  %v66_v58 = vld [vmem:[%s3810_s0 + $0x130] sm:$0xff] }
  0x14   :  { %944 = vmatprep.subr.bf16.mxu0 %v2551_v10  ;;  %v59_v57 = vld [vmem:[%s3810_s0 + $0xf8] sm:$0xff]  ;;  %v149_v61 = vpack.c.bf16 %v51_v55, %v44_v54  ;;  %v2590_v62 = vld [vmem:[%s3811_s1 + $0x220] ss:$8 sps:$4 sm:$0xff]   ;;  %v2653_v3 = vld [vmem:[%s3811_s1 + $0x64] ss:$8 sps:$4 sm:$0xff]  }
  0x15   :  { %v157_v63 = vpack.c.bf16 %v66_v58, %v59_v57  ;;  %v2595_v0 = vld [vmem:[%s3811_s1 + $0x234] ss:$8 sps:$4 sm:$0xff]   ;;  %v2652_v1 = vld [vmem:[%s3811_s1 + $0x50] ss:$8 sps:$4 sm:$0xff]   ;;  %v65_v5 = vld [vmem:[%s3810_s0 + $0x128] sm:$0xff] }
  0x16   :  { %826 = vmatpush1.bf16.msra.mxu1 %v2643_v45  ;;  %v2593_v2 = vld [vmem:[%s3811_s1 + $0x230] ss:$8 sps:$4 sm:$0xff]   ;;  %v2598_v6 = vld [vmem:[%s3811_s1 + $0x244] ss:$8 sps:$4 sm:$0xff]   ;;  %v2655_v9 = vld [vmem:[%s3811_s1 + $0x60] ss:$8 sps:$4 sm:$0xff]  }
  0x17   :  { %945 = vmatpush1.bf16.msra.mxu0 %v2553_v11  ;;  %827 = vmatprep.subr.bf16.mxu1 %v2644_v46  ;;  %v58_v4 = vld [vmem:[%s3810_s0 + $0xf0] sm:$0xff]  ;;  %v73_v7 = vld [vmem:[%s3810_s0 + $0x168] sm:$0xff]  ;;  %v80_v8 = vld [vmem:[%s3810_s0 + $0x1a0] sm:$0xff] }
  0x18   :  { %946 = vmatprep.subr.bf16.mxu0 %v2554_v12  ;;  %v2656_v10 = vld [vmem:[%s3811_s1 + $0x74] ss:$8 sps:$4 sm:$0xff]   ;;  %v156_v11 = vpack.c.bf16 %v65_v5, %v58_v4  ;;  %v2596_v12 = vld [vmem:[%s3811_s1 + $0x240] ss:$8 sps:$4 sm:$0xff]   ;;  %v164_v13 = vpack.c.bf16 %v80_v8, %v73_v7  ;;  %v2658_v15 = vld [vmem:[%s3811_s1 + $0x70] ss:$8 sps:$4 sm:$0xff]  }
  0x19   :  { %v2601_v14 = vld [vmem:[%s3811_s1 + $0x254] ss:$8 sps:$4 sm:$0xff]   ;;  %v2665_v33 = vld [vmem:[%s3811_s1 + $0xa4] ss:$8 sps:$4 sm:$0xff]   ;;  %v2608_v43 = vld [vmem:[%s3811_s1 + $0x280] ss:$8 sps:$4 sm:$0xff]  }
  0x1a   :  { %828 = vmatpush1.bf16.msra.mxu1 %v2646_v51  ;;  %v93_v36 = vld [vmem:[%s3810_s0 + $0x208] sm:$0xff]  ;;  %v108_v39 = vld [vmem:[%s3810_s0 + $0x280] sm:$0xff]  ;;  %v2668_v41 = vld [vmem:[%s3811_s1 + $0xb4] ss:$8 sps:$4 sm:$0xff]  }
  0x1b   :  { %947 = vmatpush1.bf16.msra.mxu0 %v2556_v16  ;;  %829 = vmatprep.subr.bf16.mxu1 %v2647_v53  ;;  %v2599_v16 = vld [vmem:[%s3811_s1 + $0x250] ss:$8 sps:$4 sm:$0xff]   ;;  %v101_v38 = vld [vmem:[%s3810_s0 + $0x248] sm:$0xff]  ;;  %v2613_v45 = vld [vmem:[%s3811_s1 + $0x294] ss:$8 sps:$4 sm:$0xff]  }
  0x1c   :  { %948 = vmatprep.subr.bf16.mxu0 %v2557_v17  ;;  %v2659_v17 = vld [vmem:[%s3811_s1 + $0x84] ss:$8 sps:$4 sm:$0xff]   ;;  %v178_v44 = vpack.c.bf16 %v108_v39, %v101_v38  ;;  %v2670_v46 = vld [vmem:[%s3811_s1 + $0xb0] ss:$8 sps:$4 sm:$0xff]   ;;  %v2673_v54 = vld [vmem:[%s3811_s1 + $0xc0] ss:$8 sps:$4 sm:$0xff]  }
  0x1d   :  { %v2616_v51 = vld [vmem:[%s3811_s1 + $0x2a4] ss:$8 sps:$4 sm:$0xff]   ;;  %v122_v53 = vld [vmem:[%s3810_s0 + $0x2f0] sm:$0xff]  ;;  %v2679_v4 = vld [vmem:[%s3811_s1 + $0xe0] ss:$8 sps:$4 sm:$0xff]  }
  0x1e   :  { %830 = vmatpush1.bf16.msra.mxu1 %v2649_v59  ;;  %v2674_v55 = vld [vmem:[%s3811_s1 + $0xd4] ss:$8 sps:$4 sm:$0xff]   ;;  %v2676_v59 = vld [vmem:[%s3811_s1 + $0xd0] ss:$8 sps:$4 sm:$0xff]  }
  0x1f   :  { %949 = vmatpush1.bf16.msra.mxu0 %v2559_v18  ;;  %831 = vmatprep.subr.bf16.mxu1 %v2650_v60  ;;  %v72_v18 = vld [vmem:[%s3810_s0 + $0x160] sm:$0xff]  ;;  %v2619_v58 = vld [vmem:[%s3811_s1 + $0x2b4] ss:$8 sps:$4 sm:$0xff]  }
  0x20   :  { %950 = vmatprep.subr.bf16.mxu0 %v2560_v19  ;;  %v79_v19 = vld [vmem:[%s3810_s0 + $0x198] sm:$0xff] }
  0x21   :  { %v2680_v5 = vld [vmem:[%s3811_s1 + $0xf4] ss:$8 sps:$4 sm:$0xff]  }
  0x22   :  { %832 = vmatpush1.bf16.msra.mxu1 %v2652_v1  ;;  %v2622_v1 = vld [vmem:[%s3811_s1 + $0x2c4] ss:$8 sps:$4 sm:$0xff]   ;;  %v2625_v8 = vld [vmem:[%s3811_s1 + $0x2d4] ss:$8 sps:$4 sm:$0xff]  }
  0x23   :  { %951 = vmatpush1.bf16.msra.mxu0 %v2562_v20  ;;  %833 = vmatprep.subr.bf16.mxu1 %v2653_v3  ;;  %v2604_v20 = vld [vmem:[%s3811_s1 + $0x264] ss:$8 sps:$4 sm:$0xff]  }
  0x24   :  { %952 = vmatprep.subr.bf16.mxu0 %v2563_v21  ;;  %v87_v21 = vld [vmem:[%s3810_s0 + $0x1d8] sm:$0xff]  ;;  %v136_v3 = vld [vmem:[%s3810_s0 + $0x360] sm:$0xff] }
  0x26   :  { %834 = vmatpush1.bf16.msra.mxu1 %v2655_v9  ;;  %v2682_v9 = vld [vmem:[%s3811_s1 + $0xf0] ss:$8 sps:$4 sm:$0xff]  }
  0x27   :  { %953 = vmatpush1.bf16.msra.mxu0 %v2565_v22  ;;  %835 = vmatprep.subr.bf16.mxu1 %v2656_v10  ;;  %v94_v22 = vld [vmem:[%s3810_s0 + $0x210] sm:$0xff]  ;;  %v28_v10 = vld [vmem:[%s3810_s0] sm:$0xff] }
  0x28   :  { %954 = vmatprep.subr.bf16.mxu0 %v2566_v23  ;;  %v2661_v23 = vld [vmem:[%s3811_s1 + $0x80] ss:$8 sps:$4 sm:$0xff]  }
  0x2a   :  { %836 = vmatpush1.bf16.msra.mxu1 %v2658_v15  ;;  %v43_v15 = vld [vmem:[%s3810_s0 + $0x78] sm:$0xff] }
  0x2b   :  { %955 = vmatpush1.bf16.msra.mxu0 %v2568_v24  ;;  %837 = vmatprep.subr.bf16.mxu1 %v2659_v17  ;;  %v2662_v24 = vld [vmem:[%s3811_s1 + $0x94] ss:$8 sps:$4 sm:$0xff]  }
  0x2c   :  { %956 = vmatprep.subr.bf16.mxu0 %v2569_v25  ;;  %v163_v25 = vpack.c.bf16 %v79_v19, %v72_v18  ;;  %v135_v17 = vld [vmem:[%s3810_s0 + $0x358] sm:$0xff]  ;;  %v2628_v18 = vld [vmem:[%s3811_s1 + $0x2e4] ss:$8 sps:$4 sm:$0xff]  }
  0x2d   :  { %v33_v19 = vld [vmem:[%s3810_s0 + $0x28] sm:$0xff] }
  0x2e   :  { %838 = vmatpush1.bf16.msra.mxu1 %v2661_v23 }
  0x2f   :  { %957 = vmatpush1.bf16.msra.mxu0 %v2571_v26  ;;  %v29_v26 = vld [vmem:[%s3810_s0 + $0x8] sm:$0xff]  ;;  %839 = vmatprep.subr.bf16.mxu1 %v2662_v24 }
  0x30   :  { %958 = vmatprep.subr.bf16.mxu0 %v2572_v27  ;;  %v2602_v27 = vld [vmem:[%s3811_s1 + $0x260] ss:$8 sps:$4 sm:$0xff]  }
  0x33   :  { %959 = vmatpush1.bf16.msra.mxu0 %v2574_v28  ;;  %v171_v28 = vpack.c.bf16 %v94_v22, %v87_v21 }
  0x34   :  { %960 = vmatprep.subr.bf16.mxu0 %v2575_v29  ;;  %v36_v29 = vld [vmem:[%s3810_s0 + $0x40] sm:$0xff] }
  0x35   :  { %v141_v32 = vpack.c.bf16 %v36_v29, %v29_v26 }
  0x37   :  { %961 = vmatpush1.bf16.msra.mxu0 %v2577_v30  ;;  %v2607_v30 = vld [vmem:[%s3811_s1 + $0x274] ss:$8 sps:$4 sm:$0xff]   ;;  %853 = vmatprep.mubr.bf16.mxu1 %v141_v32 }
  0x38   :  { %962 = vmatprep.subr.bf16.mxu0 %v2578_v31  ;;  %v2664_v31 = vld [vmem:[%s3811_s1 + $0x90] ss:$8 sps:$4 sm:$0xff]  }
  0x39   :  { %840 = vmatpush1.bf16.msra.mxu1 %v2664_v31 }
  0x3a   :  { %841 = vmatprep.subr.bf16.mxu1 %v2665_v33 }
  0x3b   :  { %963 = vmatpush1.bf16.msra.mxu0 %v2580_v34  ;;  %v2605_v34 = vld [vmem:[%s3811_s1 + $0x270] ss:$8 sps:$4 sm:$0xff]  }
  0x3c   :  { %964 = vmatprep.subr.bf16.mxu0 %v2581_v35  ;;  %v86_v35 = vld [vmem:[%s3810_s0 + $0x1d0] sm:$0xff] }
  0x3d   :  { %v170_v42 = vpack.c.bf16 %v93_v36, %v86_v35 }
  0x3f   :  { %965 = vmatpush1.bf16.msra.mxu0 %v2583_v37  ;;  %v2610_v37 = vld [vmem:[%s3811_s1 + $0x284] ss:$8 sps:$4 sm:$0xff]  }
  0x40   :  { %1047 = vmatprep.subr.bf16.mxu0 %v2586_v40  ;;  %v2667_v40 = vld [vmem:[%s3811_s1 + $0xa0] ss:$8 sps:$4 sm:$0xff]  }
  0x41   :  { %842 = vmatpush1.bf16.msra.mxu1 %v2667_v40 }
  0x42   :  { %967 = vmatmul.mubr.bf16.vlgmr.msra.gmra.mrb[0].mxu0 %v142_v47  ;;  %v2611_v47 = vld [vmem:[%s3811_s1 + $0x290] ss:$8 sps:$4 sm:$0xff]   ;;  %843 = vmatprep.subr.bf16.mxu1 %v2668_v41 }
  0x43   :  { %1048 = vmatpush1.bf16.msra.mxu0 %v2584_v48  ;;  %976 = vmatprep.mubr.bf16.mxu0 %v150_v49  ;;  %v100_v48 = vld [vmem:[%s3810_s0 + $0x240] sm:$0xff]  ;;  %v107_v49 = vld [vmem:[%s3810_s0 + $0x278] sm:$0xff] }
  0x44   :  { %1049 = vmatprep.subr.bf16.mxu0 %v2589_v50  ;;  %v2671_v50 = vld [vmem:[%s3811_s1 + $0xc4] ss:$8 sps:$4 sm:$0xff]   ;;  %v177_v57 = vpack.c.bf16 %v107_v49, %v100_v48 }
  0x45   :  { %844 = vmatpush1.bf16.msra.mxu1 %v2670_v46 }
  0x46   :  { %845 = vmatprep.subr.bf16.mxu1 %v2671_v50 }
  0x47   :  { %1050 = vmatpush1.bf16.msra.mxu0 %v2587_v52  ;;  %v115_v52 = vld [vmem:[%s3810_s0 + $0x2b8] sm:$0xff] }
  0x48   :  { %1051 = vmatprep.subr.bf16.mxu0 %v2592_v56  ;;  %v2614_v56 = vld [vmem:[%s3811_s1 + $0x2a0] ss:$8 sps:$4 sm:$0xff]   ;;  %v185_v60 = vpack.c.bf16 %v122_v53, %v115_v52 }
  0x49   :  { %846 = vmatpush1.bf16.msra.mxu1 %v2673_v54 }
  0x4a   :  { %977 = vmatmul.mubr.bf16.gmra.mrb[4].mxu0 %v149_v61  ;;  %v2617_v61 = vld [vmem:[%s3811_s1 + $0x2b0] ss:$8 sps:$4 sm:$0xff]   ;;  %847 = vmatprep.subr.bf16.mxu1 %v2674_v55 }
  0x4b   :  { %1052 = vmatpush1.bf16.msra.mxu0 %v2590_v62  ;;  %986 = vmatprep.mubr.bf16.mxu0 %v157_v63  ;;  %v114_v62 = vld [vmem:[%s3810_s0 + $0x2b0] sm:$0xff]  ;;  %v121_v63 = vld [vmem:[%s3810_s0 + $0x2e8] sm:$0xff] }
  0x4c   :  { %1053 = vmatprep.subr.bf16.mxu0 %v2595_v0  ;;  %v2677_v0 = vld [vmem:[%s3811_s1 + $0xe4] ss:$8 sps:$4 sm:$0xff]   ;;  %v184_v7 = vpack.c.bf16 %v121_v63, %v114_v62 }
  0x4d   :  { %848 = vmatpush1.bf16.msra.mxu1 %v2676_v59 }
  0x4e   :  { %849 = vmatprep.subr.bf16.mxu1 %v2677_v0 }
  0x4f   :  { %1054 = vmatpush1.bf16.msra.mxu0 %v2593_v2  ;;  %v129_v2 = vld [vmem:[%s3810_s0 + $0x328] sm:$0xff] }
  0x50   :  { %1055 = vmatprep.subr.bf16.mxu0 %v2598_v6  ;;  %v2620_v6 = vld [vmem:[%s3811_s1 + $0x2c0] ss:$8 sps:$4 sm:$0xff]  }
  0x51   :  { %850 = vmatpush1.bf16.msra.mxu1 %v2679_v4 }
  0x52   :  { %987 = vmatmul.mubr.bf16.gmra.mrb[8].mxu0 %v156_v11  ;;  %v35_v11 = vld [vmem:[%s3810_s0 + $0x38] sm:$0xff]  ;;  %851 = vmatprep.subr.bf16.mxu1 %v2680_v5 }
  0x53   :  { %1056 = vmatpush1.bf16.msra.mxu0 %v2596_v12  ;;  %996 = vmatprep.mubr.bf16.mxu0 %v164_v13  ;;  %v192_v12 = vpack.c.bf16 %v136_v3, %v129_v2  ;;  %v2623_v13 = vld [vmem:[%s3811_s1 + $0x2d0] ss:$8 sps:$4 sm:$0xff]   ;;  %v140_v21 = vpack.c.bf16 %v35_v11, %v28_v10 }
  0x54   :  { %1057 = vmatprep.subr.bf16.mxu0 %v2601_v14  ;;  %v128_v14 = vld [vmem:[%s3810_s0 + $0x320] sm:$0xff] }
  0x55   :  { %852 = vmatpush1.bf16.msra.mxu1 %v2682_v9  ;;  %v191_v23 = vpack.c.bf16 %v135_v17, %v128_v14 }
  0x57   :  { %1058 = vmatpush1.bf16.msra.mxu0 %v2599_v16  ;;  %v50_v16 = vld [vmem:[%s3810_s0 + $0xb0] sm:$0xff] }
  0x58   :  { %1059 = vmatprep.subr.bf16.mxu0 %v2604_v20  ;;  %v40_v20 = vld [vmem:[%s3810_s0 + $0x60] sm:$0xff]  ;;  %v148_v22 = vpack.c.bf16 %v50_v16, %v43_v15 }
  0x5a   :  { %997 = vmatmul.mubr.bf16.gmra.mrb[12].mxu0 %v163_v25 }
  0x5b   :  { %1060 = vmatpush1.bf16.msra.mxu0 %v2602_v27  ;;  %1006 = vmatprep.mubr.bf16.mxu0 %v171_v28 }
  0x5c   :  { %1061 = vmatprep.subr.bf16.mxu0 %v2607_v30 }
  0x5f   :  { %1062 = vmatpush1.bf16.msra.mxu0 %v2605_v34 }
  0x60   :  { %1063 = vmatprep.subr.bf16.mxu0 %v2610_v37 }
  0x62   :  { %1007 = vmatmul.mubr.bf16.gmra.mrb[16].mxu0 %v170_v42 }
  0x63   :  { %1064 = vmatpush1.bf16.msra.mxu0 %v2608_v43  ;;  %1016 = vmatprep.mubr.bf16.mxu0 %v178_v44 }
  0x64   :  { %1065 = vmatprep.subr.bf16.mxu0 %v2613_v45 }
  0x67   :  { %1066 = vmatpush1.bf16.msra.mxu0 %v2611_v47 }
  0x68   :  { %1067 = vmatprep.subr.bf16.mxu0 %v2616_v51 }
  0x6a   :  { %1017 = vmatmul.mubr.bf16.gmra.mrb[20].mxu0 %v177_v57 }
  0x6b   :  { %1068 = vmatpush1.bf16.msra.mxu0 %v2614_v56  ;;  %1026 = vmatprep.mubr.bf16.mxu0 %v185_v60 }
  0x6c   :  { %1069 = vmatprep.subr.bf16.mxu0 %v2619_v58 }
  0x6f   :  { %1070 = vmatpush1.bf16.msra.mxu0 %v2617_v61 }
  0x70   :  { %1071 = vmatprep.subr.bf16.mxu0 %v2622_v1 }
  0x72   :  { %1027 = vmatmul.mubr.bf16.gmra.mrb[24].mxu0 %v184_v7 }
  0x73   :  { %1072 = vmatpush1.bf16.msra.mxu0 %v2620_v6  ;;  %1036 = vmatprep.mubr.bf16.mxu0 %v192_v12 }
  0x74   :  { %1073 = vmatprep.subr.bf16.mxu0 %v2625_v8 }
  0x75   :  { %12 = vsyncpa [#allocation3], 0  ;;  %v2626_v24 = vld [vmem:[%s3811_s1 + $0x2e0] ss:$8 sps:$4 sm:$0xff]   ;;  %v145_v25 = vpack.c.bf16 %v40_v20, %v33_v19  ;;  %854 = vmatmul.mubr.bf16.vlgmr.msra.gmra.mrb[0].mxu1 %v140_v21  ;;  %v2633_v26 = vld [vmem:[%s3811_s1 + $0x2f4] ss:$8 sps:$4 sm:$0xff]  }
  0x76   :  { %863 = vmatprep.mubr.bf16.mxu1 %v148_v22  ;;  %v42_v27 = vld [vmem:[%s3810_s0 + $0x70] sm:$0xff]  ;;  %v49_v28 = vld [vmem:[%s3810_s0 + $0xa8] sm:$0xff]  ;;  %v64_v30 = vld [vmem:[%s3810_s0 + $0x120] sm:$0xff]  ;;  %vm796_vm0 = vcmask 130048  }
  0x77   :  { %1074 = vmatpush1.bf16.msra.mxu0 %v2623_v13  ;;  %v57_v29 = vld [vmem:[%s3810_s0 + $0xe8] sm:$0xff]  ;;  %v2683_v31 = vld [vmem:[%s3813_s3 + $0x40] sm:$0xff]   ;;  %v2631_v34 = vld [vmem:[%s3811_s1 + $0x2f0] ss:$8 sps:$4 sm:$0xff]   ;;  %v147_v37 = vpack.c.bf16 %v49_v28, %v42_v27 }
  0x78   :  { %1075 = vmatprep.subr.bf16.mxu0 %v2628_v18  ;;  %v2684_v32 = vld [vmem:[%s3813_s3] sm:$0xff]   ;;  %v2685_v33 = vld [vmem:[%s3813_s3 + $0x48] sm:$0xff]   ;;  %v39_v36 = vld [vmem:[%s3810_s0 + $0x58] sm:$0xff]  ;;  %v155_v41 = vpack.c.bf16 %v64_v30, %v57_v29  ;;  %2292 = vmatprep.subr.bf16.mxu1 %v2683_v31 }
  0x79   :  { %v32_v35 = vld [vmem:[%s3810_s0 + $0x20] sm:$0xff]  ;;  %v47_v39 = vld [vmem:[%s3810_s0 + $0x98] sm:$0xff]  ;;  %v54_v40 = vld [vmem:[%s3810_s0 + $0xd0] sm:$0xff]  ;;  %2293 = vmatpush3.bf16.msra.mxu1 %v2684_v32 }
  0x7a   :  { %1037 = vmatmul.mubr.bf16.gmra.mrb[28].mxu0 %v191_v23  ;;  %v2639_v38 = vld [vmem:[%s3811_s1 + $0x304] ss:$8 sps:$4 sm:$0xff]   ;;  %v144_v43 = vpack.c.bf16 %v39_v36, %v32_v35  ;;  %2294 = vmatprep.subr.bf16.mxu1 %v2685_v33  ;;  %v2687_v44 = vld [vmem:[%s3813_s3 + $0x50] sm:$0xff]   ;;  %v2637_v45 = vld [vmem:[%s3811_s1 + $0x300] ss:$8 sps:$4 sm:$0xff]   ;;  %v152_v46 = vpack.c.bf16 %v54_v40, %v47_v39 }
  0x7b   :  { %1076 = vmatpush1.bf16.msra.mxu0 %v2626_v24  ;;  %1079 = vmatprep.mubr.bf16.mxu0 %v145_v25  ;;  %v2686_v42 = vld [vmem:[%s3813_s3 + $0x8] sm:$0xff]   ;;  %v56_v47 = vld [vmem:[%s3810_s0 + $0xe0] sm:$0xff]  ;;  %v63_v48 = vld [vmem:[%s3810_s0 + $0x118] sm:$0xff] }
  0x7c   :  { %1077 = vmatprep.subr.bf16.mxu0 %v2633_v26  ;;  %v71_v49 = vld [vmem:[%s3810_s0 + $0x158] sm:$0xff]  ;;  %v78_v50 = vld [vmem:[%s3810_s0 + $0x190] sm:$0xff]  ;;  %v53_v54 = vld [vmem:[%s3810_s0 + $0xc8] sm:$0xff]  ;;  %v154_v55 = vpack.c.bf16 %v63_v48, %v56_v47 }
  0x7d   :  { %864 = vmatmul.mubr.bf16.gmra.mrb[4].mxu1 %v147_v37  ;;  %v2688_v51 = vld [vmem:[%s3813_s3 + $0x10] sm:$0xff]   ;;  %v2689_v52 = vld [vmem:[%s3813_s3 + $0x58] sm:$0xff]   ;;  %v61_v56 = vld [vmem:[%s3810_s0 + $0x108] sm:$0xff]  ;;  %v162_v58 = vpack.c.bf16 %v78_v50, %v71_v49 }
  0x7e   :  { %873 = vmatprep.mubr.bf16.mxu1 %v155_v41  ;;  %2295 = vmatpush3.bf16.msra.mxu1 %v2686_v42  ;;  %v46_v53 = vld [vmem:[%s3810_s0 + $0x90] sm:$0xff]  ;;  %v68_v57 = vld [vmem:[%s3810_s0 + $0x140] sm:$0xff]  ;;  %v2690_v59 = vld [vmem:[%s3813_s3 + $0x18] sm:$0xff]  }
  0x7f   :  { %1078 = vmatpush1.bf16.msra.mxu0 %v2631_v34  ;;  %2296 = vmatprep.subr.bf16.mxu1 %v2687_v44  ;;  %v151_v60 = vpack.c.bf16 %v53_v54, %v46_v53  ;;  %v2691_v61 = vld [vmem:[%s3813_s3 + $0x60] sm:$0xff]   ;;  %v159_v62 = vpack.c.bf16 %v68_v57, %v61_v56  ;;  %v70_v63 = vld [vmem:[%s3810_s0 + $0x150] sm:$0xff]  ;;  %v77_v0 = vld [vmem:[%s3810_s0 + $0x188] sm:$0xff] }
  0x80   :  { %1160 = vmatprep.subr.bf16.mxu0 %v2639_v38  ;;  %v85_v1 = vld [vmem:[%s3810_s0 + $0x1c8] sm:$0xff]  ;;  %v92_v2 = vld [vmem:[%s3810_s0 + $0x200] sm:$0xff]  ;;  %v67_v6 = vld [vmem:[%s3810_s0 + $0x138] sm:$0xff]  ;;  %v161_v7 = vpack.c.bf16 %v77_v0, %v70_v63 }
  0x81   :  { %v2692_v3 = vld [vmem:[%s3813_s3 + $0x20] sm:$0xff]   ;;  %v2693_v4 = vld [vmem:[%s3813_s3 + $0x68] sm:$0xff]   ;;  %v75_v8 = vld [vmem:[%s3810_s0 + $0x178] sm:$0xff]  ;;  %v169_v10 = vpack.c.bf16 %v92_v2, %v85_v1 }
  0x82   :  { %1080 = vmatmul.mubr.bf16.vlgmr.msra.gmra.mrb[0].mxu0 %v144_v43  ;;  %2297 = vmatpush3.bf16.msra.mxu1 %v2688_v51  ;;  %v60_v5 = vld [vmem:[%s3810_s0 + $0x100] sm:$0xff]  ;;  %v82_v9 = vld [vmem:[%s3810_s0 + $0x1b0] sm:$0xff]  ;;  %v2694_v11 = vld [vmem:[%s3813_s3 + $0x28] sm:$0xff]  }
  0x83   :  { %1161 = vmatpush1.bf16.msra.mxu0 %v2637_v45  ;;  %1089 = vmatprep.mubr.bf16.mxu0 %v152_v46  ;;  %v158_v12 = vpack.c.bf16 %v67_v6, %v60_v5  ;;  %v166_v13 = vpack.c.bf16 %v82_v9, %v75_v8  ;;  %v84_v14 = vld [vmem:[%s3810_s0 + $0x1c0] sm:$0xff]  ;;  %v91_v15 = vld [vmem:[%s3810_s0 + $0x1f8] sm:$0xff]  ;;  %v106_v17 = vld [vmem:[%s3810_s0 + $0x270] sm:$0xff] }
  0x84   :  { %2298 = vmatprep.subr.bf16.mxu1 %v2689_v52  ;;  %v99_v16 = vld [vmem:[%s3810_s0 + $0x238] sm:$0xff]  ;;  %v74_v18 = vld [vmem:[%s3810_s0 + $0x170] sm:$0xff]  ;;  %v81_v19 = vld [vmem:[%s3810_s0 + $0x1a8] sm:$0xff]  ;;  %v168_v20 = vpack.c.bf16 %v91_v15, %v84_v14 }
  0x85   :  { %874 = vmatmul.mubr.bf16.gmra.mrb[8].mxu1 %v154_v55  ;;  %v89_v21 = vld [vmem:[%s3810_s0 + $0x1e8] sm:$0xff]  ;;  %v96_v22 = vld [vmem:[%s3810_s0 + $0x220] sm:$0xff]  ;;  %v176_v23 = vpack.c.bf16 %v106_v17, %v99_v16  ;;  %v165_v24 = vpack.c.bf16 %v81_v19, %v74_v18  ;;  %v98_v26 = vld [vmem:[%s3810_s0 + $0x230] sm:$0xff] }
  0x86   :  { %883 = vmatprep.mubr.bf16.mxu1 %v162_v58  ;;  %2299 = vmatpush3.bf16.msra.mxu1 %v2690_v59  ;;  %v173_v25 = vpack.c.bf16 %v96_v22, %v89_v21  ;;  %v105_v27 = vld [vmem:[%s3810_s0 + $0x268] sm:$0xff]  ;;  %v120_v29 = vld [vmem:[%s3810_s0 + $0x2e0] sm:$0xff]  ;;  %v95_v31 = vld [vmem:[%s3810_s0 + $0x218] sm:$0xff] }
  0x87   :  { %2300 = vmatprep.subr.bf16.mxu1 %v2691_v61  ;;  %v113_v28 = vld [vmem:[%s3810_s0 + $0x2a8] sm:$0xff]  ;;  %v88_v30 = vld [vmem:[%s3810_s0 + $0x1e0] sm:$0xff]  ;;  %v175_v32 = vpack.c.bf16 %v105_v27, %v98_v26  ;;  %v103_v33 = vld [vmem:[%s3810_s0 + $0x258] sm:$0xff] }
  0x88   :  { %v110_v34 = vld [vmem:[%s3810_s0 + $0x290] sm:$0xff]  ;;  %v183_v35 = vpack.c.bf16 %v120_v29, %v113_v28  ;;  %v172_v36 = vpack.c.bf16 %v95_v31, %v88_v30  ;;  %v112_v38 = vld [vmem:[%s3810_s0 + $0x2a0] sm:$0xff]  ;;  %v119_v39 = vld [vmem:[%s3810_s0 + $0x2d8] sm:$0xff] }
  0x89   :  { %v180_v37 = vpack.c.bf16 %v110_v34, %v103_v33  ;;  %v127_v40 = vld [vmem:[%s3810_s0 + $0x318] sm:$0xff]  ;;  %v134_v41 = vld [vmem:[%s3810_s0 + $0x350] sm:$0xff]  ;;  %v109_v43 = vld [vmem:[%s3810_s0 + $0x288] sm:$0xff]  ;;  %v182_v44 = vpack.c.bf16 %v119_v39, %v112_v38 }
  0x8a   :  { %1090 = vmatmul.mubr.bf16.gmra.mrb[4].mxu0 %v151_v60  ;;  %2301 = vmatpush3.bf16.msra.mxu1 %v2692_v3  ;;  %v102_v42 = vld [vmem:[%s3810_s0 + $0x250] sm:$0xff]  ;;  %v117_v45 = vld [vmem:[%s3810_s0 + $0x2c8] sm:$0xff]  ;;  %v124_v46 = vld [vmem:[%s3810_s0 + $0x300] sm:$0xff]  ;;  %v190_v47 = vpack.c.bf16 %v134_v41, %v127_v40 }
  0x8b   :  { %1099 = vmatprep.mubr.bf16.mxu0 %v159_v62  ;;  %2302 = vmatprep.subr.bf16.mxu1 %v2693_v4  ;;  %v179_v48 = vpack.c.bf16 %v109_v43, %v102_v42  ;;  %v187_v49 = vpack.c.bf16 %v124_v46, %v117_v45  ;;  %v126_v50 = vld [vmem:[%s3810_s0 + $0x310] sm:$0xff]  ;;  %v133_v51 = vld [vmem:[%s3810_s0 + $0x348] sm:$0xff]  ;;  %v116_v52 = vld [vmem:[%s3810_s0 + $0x2c0] sm:$0xff]  ;;  %v2795_v62 = vmov 0  }
  0x8c   :  { %v123_v53 = vld [vmem:[%s3810_s0 + $0x2f8] sm:$0xff]  ;;  %v189_v54 = vpack.c.bf16 %v133_v51, %v126_v50  ;;  %v138_v56 = vld [vmem:[%s3810_s0 + $0x370] sm:$0xff]  ;;  %v137_v60 = vld [vmem:[%s3810_s0 + $0x368] sm:$0xff] }
  0x8d   :  { %884 = vmatmul.mubr.bf16.gmra.mrb[12].mxu1 %v161_v7  ;;  %v131_v55 = vld [vmem:[%s3810_s0 + $0x338] sm:$0xff]  ;;  %v186_v57 = vpack.c.bf16 %v123_v53, %v116_v52  ;;  %v130_v59 = vld [vmem:[%s3810_s0 + $0x330] sm:$0xff]  ;;  %v41_v0 = vld [vmem:[%s3810_s0 + $0x68] sm:$0xff] }
  0x8e   :  { %893 = vmatprep.mubr.bf16.mxu1 %v169_v10  ;;  %2303 = vmatpush3.bf16.msra.mxu1 %v2694_v11  ;;  %v194_v58 = vpack.c.bf16 %v138_v56, %v131_v55  ;;  %v193_v61 = vpack.c.bf16 %v137_v60, %v130_v59  ;;  %v34_v63 = vld [vmem:[%s3810_s0 + $0x30] sm:$0xff]  ;;  %v48_v2 = vld [vmem:[%s3810_s0 + $0xa0] sm:$0xff]  ;;  %v55_v3 = vld [vmem:[%s3810_s0 + $0xd8] sm:$0xff]  ;;  %v296_v56 = vlaneseq }
  0x8f   :  { %v146_v1 = vpack.c.bf16 %v41_v0, %v34_v63  ;;  %v153_v4 = vpack.c.bf16 %v55_v3, %v48_v2  ;;  %v62_v5 = vld [vmem:[%s3810_s0 + $0x110] sm:$0xff]  ;;  %v69_v6 = vld [vmem:[%s3810_s0 + $0x148] sm:$0xff]  ;;  %v76_v10 = vld [vmem:[%s3810_s0 + $0x180] sm:$0xff] }
  0x90   :  { %v2695_v7 = vld [vmem:[%s3813_s3 + $0x70] sm:$0xff]   ;;  %v160_v9 = vpack.c.bf16 %v69_v6, %v62_v5  ;;  %v83_v11 = vld [vmem:[%s3810_s0 + $0x1b8] sm:$0xff]  ;;  %v97_v14 = vld [vmem:[%s3810_s0 + $0x228] sm:$0xff] }
  0x91   :  { %v2696_v8 = vld [vmem:[%s3813_s3 + $0x30] sm:$0xff]   ;;  %2304 = vmatprep.subr.bf16.mxu1 %v2695_v7  ;;  %v104_v16 = vld [vmem:[%s3810_s0 + $0x260] sm:$0xff]  ;;  %v111_v17 = vld [vmem:[%s3810_s0 + $0x298] sm:$0xff] }
  0x92   :  { %1100 = vmatmul.mubr.bf16.gmra.mrb[8].mxu0 %v158_v12  ;;  %2305 = vmatpush3.bf16.msra.mxu1 %v2696_v8  ;;  %v167_v12 = vpack.c.bf16 %v83_v11, %v76_v10  ;;  %v181_v18 = vpack.c.bf16 %v111_v17, %v104_v16  ;;  %v118_v19 = vld [vmem:[%s3810_s0 + $0x2d0] sm:$0xff]  ;;  %v132_v22 = vld [vmem:[%s3810_s0 + $0x340] sm:$0xff]  ;;  %v2698_v26 = vld [vmem:[%s3813_s3 + $0x38] sm:$0xff]  }
  0x93   :  { %1109 = vmatprep.mubr.bf16.mxu0 %v166_v13  ;;  %v90_v13 = vld [vmem:[%s3810_s0 + $0x1f0] sm:$0xff]  ;;  %v294_v63 = vld [vmem:[%s3812_s2] sm:$0x3] }
  0x94   :  { %v174_v15 = vpack.c.bf16 %v97_v14, %v90_v13 }
  0x95   :  { %894 = vmatmul.mubr.bf16.gmra.mrb[16].mxu1 %v168_v20  ;;  %v125_v20 = vld [vmem:[%s3810_s0 + $0x308] sm:$0xff] }
  0x96   :  { %903 = vmatprep.mubr.bf16.mxu1 %v176_v23  ;;  %v188_v21 = vpack.c.bf16 %v125_v20, %v118_v19  ;;  %v139_v23 = vld [vmem:[%s3810_s0 + $0x378] sm:$0xff] }
  0x9a   :  { %1110 = vmatmul.mubr.bf16.gmra.mrb[12].mxu0 %v165_v24  ;;  %v195_v24 = vpack.c.bf16 %v139_v23, %v132_v22 }
  0x9b   :  { %1119 = vmatprep.mubr.bf16.mxu0 %v173_v25  ;;  %v2697_v25 = vld [vmem:[%s3813_s3 + $0x78] sm:$0xff]  }
  0x9c   :  { %2306 = vmatprep.subr.bf16.mxu1 %v2697_v25 }
  0x9d   :  { %904 = vmatmul.mubr.bf16.gmra.mrb[20].mxu1 %v175_v32 }
  0x9e   :  { %913 = vmatprep.mubr.bf16.mxu1 %v183_v35  ;;  %2307 = vmatpush3.bf16.msra.mxu1 %v2698_v26  ;;  %v3532_v35 = vld [vmem:[%s3815_s5] sm:$0xff]  }
  0x9f   :  { %2372 = vmatprep.subr.bf16.mxu1 %v3532_v35 }
  0xa2   :  { %1120 = vmatmul.mubr.bf16.gmra.mrb[16].mxu0 %v172_v36 }
  0xa3   :  { %1129 = vmatprep.mubr.bf16.mxu0 %v180_v37 }
  0xa5   :  { %914 = vmatmul.mubr.bf16.gmra.mrb[24].mxu1 %v182_v44 }
  0xa6   :  { %923 = vmatprep.mubr.bf16.mxu1 %v190_v47 }
  0xaa   :  { %1130 = vmatmul.mubr.bf16.gmra.mrb[20].mxu0 %v179_v48 }
  0xab   :  { %1139 = vmatprep.mubr.bf16.mxu0 %v187_v49 }
  0xad   :  { %924 = vmatmul.mubr.bf16.gmra.mrb[28].mxu1 %v189_v54 }
  0xb2   :  { %1140 = vmatmul.mubr.bf16.gmra.mrb[24].mxu0 %v186_v57 }
  0xb3   :  { %1149 = vmatprep.mubr.bf16.mxu0 %v194_v58 }
  0xba   :  { %1150 = vmatmul.mubr.bf16.gmra.mrb[28].mxu0 %v193_v61  ;;  %v297_v61 = vshrl.u32 %v296_v56, 7 }
  0xbb   :  { %1192 = vmatprep.mubr.bf16.mxu0 %v2795_v62 }
  0xbc   :  { %v302_v0 = vsub.s32 1, %v297_v61 }
  0xbe   :  { %v3588_v2 = vrot.slane %v294_v63, %v302_v0 }
  0xc2   :  { %2179 = vmatmul.mubr.msk.bf16.vlgmr.msra.gmra.mrb[0].mxu0 %vm796_vm0, %v146_v1 }
  0xc3   :  { %1202 = vmatprep.mubr.bf16.mxu0 %v2795_v62 }
  0xca   :  { %2180 = vmatmul.mubr.msk.bf16.gmra.mrb[4].mxu0 %vm796_vm0, %v153_v4 }
  0xcb   :  { %1212 = vmatprep.mubr.bf16.mxu0 %v2795_v62 }
  0xd2   :  { %2181 = vmatmul.mubr.msk.bf16.gmra.mrb[8].mxu0 %vm796_vm0, %v160_v9 }
  0xd3   :  { %1222 = vmatprep.mubr.bf16.mxu0 %v2795_v62 }
  0xda   :  { %2182 = vmatmul.mubr.msk.bf16.gmra.mrb[12].mxu0 %vm796_vm0, %v167_v12 }
  0xdb   :  { %1232 = vmatprep.mubr.bf16.mxu0 %v2795_v62 }
  0xe2   :  { %2183 = vmatmul.mubr.msk.bf16.gmra.mrb[16].mxu0 %vm796_vm0, %v174_v15 }
  0xe3   :  { %1242 = vmatprep.mubr.bf16.mxu0 %v2795_v62 }
  0xea   :  { %2184 = vmatmul.mubr.msk.bf16.gmra.mrb[20].mxu0 %vm796_vm0, %v181_v18 }
  0xeb   :  { %1252 = vmatprep.mubr.bf16.mxu0 %v2795_v62 }
  0xf2   :  { %2185 = vmatmul.mubr.msk.bf16.gmra.mrb[24].mxu0 %vm796_vm0, %v188_v21 }
  0xf3   :  { %1262 = vmatprep.mubr.bf16.mxu0 %v2795_v62  ;;  %v298_v62 = vsub.s32 0, %v297_v61 }
  0xf5   :  { %v3586_v1 = vrot.slane %v294_v63, %v298_v62 }
  0xfa   :  { %2186 = vmatmul.mubr.msk.bf16.gmra.mrb[28].mxu0 %vm796_vm0, %v195_v24 }
 0x148   :  { %v855_v27 = vpop.f32.mrb[0].mxu1 }
 0x149   :  { %v857_v28 = vpop.f32.mrb[1].mxu1  ;;  %v856_v3 = vadd.f32 %v855_v27, %v3586_v1 }
 0x14a   :  { %v859_v29 = vpop.f32.mrb[2].mxu1  ;;  %v858_v4 = vadd.f32 %v857_v28, %v3588_v2 }
 0x14b   :  { %v861_v30 = vpop.f32.mrb[3].mxu1  ;;  %v860_v6 = vadd.f32 %v859_v29, %v3586_v1 }
 0x14c   :  { %v862_v9 = vadd.f32 %v861_v30, %v3588_v2 }
 0x150   :  { %v865_v31 = vpop.f32.mrb[4].mxu1 }
 0x151   :  { %v867_v32 = vpop.f32.mrb[5].mxu1  ;;  %v866_v18 = vadd.f32 %v865_v31, %v3586_v1 }
 0x152   :  { %v3525_v33 = vpop.f32.mrb[6].mxu1  ;;  %v868_v20 = vadd.f32 %v867_v32, %v3588_v2  ;;  %v2700_v32 = vld [vmem:[%s3815_s5 + $0x8] sm:$0xff]  }
 0x153   :  { %v3527_v34 = vpop.f32.mrb[7].mxu1  ;;  %v870_v27 = vadd.f32 %v3525_v33, %v3586_v1 }
 0x154   :  { %v872_v56 = vadd.f32 %v3527_v34, %v3588_v2 }
 0x158   :  { %v3534_v36 = vpop.f32.mrb[8].mxu1 }
 0x159   :  { %v3536_v37 = vpop.f32.mrb[9].mxu1  ;;  %v876_v34 = vadd.f32 %v3534_v36, %v3586_v1 }
 0x15a   :  { %v3539_v38 = vpop.f32.mrb[10].mxu1 }
 0x15b   :  { %v3541_v39 = vpop.f32.mrb[11].mxu1  ;;  %v880_v36 = vadd.f32 %v3539_v38, %v3586_v1 }
 0x160   :  { %v3543_v40 = vpop.f32.mrb[12].mxu1 }
 0x161   :  { %v3545_v41 = vpop.f32.mrb[13].mxu1 }
 0x162   :  { %v3547_v42 = vpop.f32.mrb[14].mxu1 }
 0x163   :  { %v3549_v43 = vpop.f32.mrb[15].mxu1 }
 0x168   :  { %v3551_v44 = vpop.f32.mrb[16].mxu1 }
 0x169   :  { %v3553_v45 = vpop.f32.mrb[17].mxu1 }
 0x16a   :  { %v3555_v46 = vpop.f32.mrb[18].mxu1 }
 0x16b   :  { %v3557_v47 = vpop.f32.mrb[19].mxu1 }
 0x170   :  { %v3559_v48 = vpop.f32.mrb[20].mxu1 }
 0x171   :  { %v3561_v49 = vpop.f32.mrb[21].mxu1 }
 0x172   :  { %v3563_v50 = vpop.f32.mrb[22].mxu1 }
 0x173   :  { %v3565_v51 = vpop.f32.mrb[23].mxu1 }
 0x178   :  { %v3567_v52 = vpop.f32.mrb[24].mxu1 }
 0x179   :  { %v3569_v53 = vpop.f32.mrb[25].mxu1 }
 0x17a   :  { %v3571_v54 = vpop.f32.mrb[26].mxu1 }
 0x17b   :  { %v3573_v55 = vpop.f32.mrb[27].mxu1 }
 0x180   :  { %v3575_v57 = vpop.f32.mrb[28].mxu1 }
 0x181   :  { %v3577_v58 = vpop.f32.mrb[29].mxu1 }
 0x182   :  { %v3579_v59 = vpop.f32.mrb[30].mxu1 }
 0x183   :  { %v3581_v60 = vpop.f32.mrb[31].mxu1 }
 0x195   :  { %v1194_v5 = vpop.f32.mrb[0].mxu0 }
 0x196   :  { %v2405_v7 = vadd.f32 %v1194_v5, %v856_v3  ;;  %v1196_v8 = vpop.f32.mrb[1].mxu0 }
 0x197   :  { %v2407_v10 = vadd.f32 %v1196_v8, %v858_v4  ;;  %v1198_v11 = vpop.f32.mrb[2].mxu0 }
 0x198   :  { %v1305_v12 = vmul.f32 0.01, %v2405_v7  ;;  %v2409_v13 = vadd.f32 %v1198_v11, %v860_v6  ;;  %v1200_v14 = vpop.f32.mrb[3].mxu0  ;;  %vm1273_vm1 = vcmp.gt.f32.partialorder %v2405_v7, 0.0  ;;  %v878_v6 = vadd.f32 %v3536_v37, %v3588_v2 }
 0x199   :  { %v1306_v15 = vmul.f32 0.01, %v2407_v10  ;;  %v2411_v16 = vadd.f32 %v1200_v14, %v862_v9  ;;  %vm1274_vm2 = vcmp.gt.f32.partialorder %v2407_v10, 0.0  ;;  %v882_v37 = vadd.f32 %v3541_v39, %v3588_v2 }
 0x19a   :  { %vm1275_vm3 = vcmp.gt.f32.partialorder %v2409_v13, 0.0  ;;  %v1307_v17 = vmul.f32 0.01, %v2409_v13  ;;  %v1337_v21 = vsel %vm1273_vm1, %v2405_v7, %v1305_v12  ;;  %v2701_v7 = vld [vmem:[%s3815_s5 + $0x10] sm:$0xff]  }
 0x19b   :  { %vm1276_vm4 = vcmp.gt.f32.partialorder %v2411_v16, 0.0  ;;  %v1308_v19 = vmul.f32 0.01, %v2411_v16  ;;  %v1338_v25 = vsel %vm1274_vm2, %v2407_v10, %v1306_v15 }
 0x19c   :  { %v1339_v22 = vsel %vm1275_vm3, %v2409_v13, %v1307_v17 }
 0x19d   :  { %v1369_v23 = vpack.c.bf16 %v1339_v22, %v1337_v21  ;;  %v1204_v24 = vpop.f32.mrb[4].mxu0  ;;  %v1340_v26 = vsel %vm1276_vm4, %v2411_v16, %v1308_v19 }
 0x19e   :  { %v2413_v28 = vadd.f32 %v1204_v24, %v866_v18  ;;  %v1206_v29 = vpop.f32.mrb[5].mxu0  ;;  %v1370_v30 = vpack.c.bf16 %v1340_v26, %v1338_v25  ;;  %v888_v24 = vadd.f32 %v3545_v41, %v3588_v2 }
 0x19f   :  { %v2415_v31 = vadd.f32 %v1206_v29, %v868_v20  ;;  %v1208_v61 = vpop.f32.mrb[6].mxu0 }
 0x1a0   :  { %v1309_v62 = vmul.f32 0.01, %v2413_v28  ;;  %v2417_v63 = vadd.f32 %v1208_v61, %v870_v27  ;;  %v1210_v0 = vpop.f32.mrb[7].mxu0  ;;  %1552 = vmatprep.mubr.bf16.mxu1 %v1370_v30  ;;  %vm1277_vm5 = vcmp.gt.f32.partialorder %v2413_v28, 0.0 }
 0x1a1   :  { %v1310_v3 = vmul.f32 0.01, %v2415_v31  ;;  %v2419_v4 = vadd.f32 %v1210_v0, %v872_v56  ;;  %1553 = vmatmul.mubr.bf16.vlgmr.msra.gmra.mrb[32].mxu1 %v1369_v23  ;;  %vm1278_vm6 = vcmp.gt.f32.partialorder %v2415_v31, 0.0  ;;  %v886_v23 = vadd.f32 %v3543_v40, %v3586_v1 }
 0x1a2   :  { %vm1279_vm7 = vcmp.gt.f32.partialorder %v2417_v63, 0.0  ;;  %v1311_v33 = vmul.f32 0.01, %v2417_v63  ;;  %2373 = vmatpush3.bf16.msra.mxu1 %v3532_v35  ;;  %v1341_v8 = vsel %vm1277_vm5, %v2413_v28, %v1309_v62  ;;  %v890_v56 = vadd.f32 %v3547_v42, %v3586_v1 }
 0x1a3   :  { %vm1280_vm8 = vcmp.gt.f32.partialorder %v2419_v4, 0.0  ;;  %v1312_v5 = vmul.f32 0.01, %v2419_v4  ;;  %2374 = vmatprep.subr.bf16.mxu1 %v2700_v32  ;;  %v1342_v11 = vsel %vm1278_vm6, %v2415_v31, %v1310_v3  ;;  %v892_v40 = vadd.f32 %v3549_v43, %v3588_v2 }
 0x1a4   :  { %v1343_v9 = vsel %vm1279_vm7, %v2417_v63, %v1311_v33  ;;  %v896_v42 = vadd.f32 %v3551_v44, %v3586_v1  ;;  %v898_v43 = vadd.f32 %v3553_v45, %v3588_v2  ;;  %v902_v44 = vadd.f32 %v3557_v47, %v3588_v2 }
 0x1a5   :  { %v1214_v10 = vpop.f32.mrb[8].mxu0  ;;  %v1344_v12 = vsel %vm1280_vm8, %v2419_v4, %v1312_v5  ;;  %v1371_v13 = vpack.c.bf16 %v1343_v9, %v1341_v8  ;;  %v908_v47 = vadd.f32 %v3561_v49, %v3588_v2 }
 0x1a6   :  { %v2421_v35 = vadd.f32 %v1214_v10, %v876_v34  ;;  %v1216_v14 = vpop.f32.mrb[9].mxu0  ;;  %v1372_v15 = vpack.c.bf16 %v1344_v12, %v1342_v11  ;;  %2375 = vmatpush3.bf16.msra.mxu1 %v2700_v32  ;;  %v900_v12 = vadd.f32 %v3555_v46, %v3586_v1  ;;  %v906_v46 = vadd.f32 %v3559_v48, %v3586_v1 }
 0x1a7   :  { %v2423_v16 = vadd.f32 %v1216_v14, %v878_v6  ;;  %v1218_v17 = vpop.f32.mrb[10].mxu0  ;;  %2376 = vmatprep.subr.bf16.mxu1 %v2701_v7  ;;  %v912_v48 = vadd.f32 %v3565_v51, %v3588_v2  ;;  %v918_v51 = vadd.f32 %v3569_v53, %v3588_v2 }
 0x1a8   :  { %v1313_v18 = vmul.f32 0.01, %v2421_v35  ;;  %v2425_v19 = vadd.f32 %v1218_v17, %v880_v36  ;;  %v1220_v20 = vpop.f32.mrb[11].mxu0  ;;  %1560 = vmatprep.mubr.bf16.mxu1 %v1372_v15  ;;  %vm1281_vm9 = vcmp.gt.f32.partialorder %v2421_v35, 0.0 }
 0x1a9   :  { %v1314_v21 = vmul.f32 0.01, %v2423_v16  ;;  %v2427_v22 = vadd.f32 %v1220_v20, %v882_v37  ;;  %1561 = vmatmul.mubr.bf16.gmra.mrb[36].mxu1 %v1371_v13  ;;  %vm1282_vm10 = vcmp.gt.f32.partialorder %v2423_v16, 0.0 }
 0x1aa   :  { %vm1283_vm11 = vcmp.gt.f32.partialorder %v2425_v19, 0.0  ;;  %v1315_v38 = vmul.f32 0.01, %v2425_v19  ;;  %2377 = vmatpush3.bf16.msra.mxu1 %v2701_v7  ;;  %v1345_v25 = vsel %vm1281_vm9, %v2421_v35, %v1313_v18 }
 0x1ab   :  { %vm1284_vm12 = vcmp.gt.f32.partialorder %v2427_v22, 0.0  ;;  %v1316_v39 = vmul.f32 0.01, %v2427_v22  ;;  %v1346_v28 = vsel %vm1282_vm10, %v2423_v16, %v1314_v21 }
 0x1ac   :  { %v1347_v26 = vsel %vm1283_vm11, %v2425_v19, %v1315_v38 }
 0x1ad   :  { %v1224_v27 = vpop.f32.mrb[12].mxu0  ;;  %v1348_v29 = vsel %vm1284_vm12, %v2427_v22, %v1316_v39  ;;  %v1373_v30 = vpack.c.bf16 %v1347_v26, %v1345_v25  ;;  %v910_v25 = vadd.f32 %v3563_v50, %v3586_v1  ;;  %v916_v50 = vadd.f32 %v3567_v52, %v3586_v1 }
 0x1ae   :  { %v2429_v31 = vadd.f32 %v1224_v27, %v886_v23  ;;  %v1226_v61 = vpop.f32.mrb[13].mxu0  ;;  %v1374_v32 = vpack.c.bf16 %v1348_v29, %v1346_v28  ;;  %v922_v52 = vadd.f32 %v3573_v55, %v3588_v2  ;;  %v928_v55 = vadd.f32 %v3577_v58, %v3588_v2 }
 0x1af   :  { %v2431_v62 = vadd.f32 %v1226_v61, %v888_v24  ;;  %v1228_v63 = vpop.f32.mrb[14].mxu0 }
 0x1b0   :  { %v1317_v0 = vmul.f32 0.01, %v2429_v31  ;;  %v2433_v3 = vadd.f32 %v1228_v63, %v890_v56  ;;  %v1230_v41 = vpop.f32.mrb[15].mxu0  ;;  %1568 = vmatprep.mubr.bf16.mxu1 %v1374_v32  ;;  %vm1285_vm13 = vcmp.gt.f32.partialorder %v2429_v31, 0.0 }
 0x1b1   :  { %v1318_v4 = vmul.f32 0.01, %v2431_v62  ;;  %v2435_v33 = vadd.f32 %v1230_v41, %v892_v40  ;;  %1569 = vmatmul.mubr.bf16.gmra.mrb[40].mxu1 %v1373_v30  ;;  %vm1286_vm14 = vcmp.gt.f32.partialorder %v2431_v62, 0.0 }
 0x1b2   :  { %vm1287_vm15 = vcmp.gt.f32.partialorder %v2433_v3, 0.0  ;;  %v1319_v34 = vmul.f32 0.01, %v2433_v3  ;;  %v1349_v6 = vsel %vm1285_vm13, %v2429_v31, %v1317_v0 }
 0x1b3   :  { %vm1288_vm0 = vcmp.gt.f32.partialorder %v2435_v33, 0.0  ;;  %v1320_v5 = vmul.f32 0.01, %v2435_v33  ;;  %v1350_v9 = vsel %vm1286_vm14, %v2431_v62, %v1318_v4 }
 0x1b4   :  { %v1351_v7 = vsel %vm1287_vm15, %v2433_v3, %v1319_v34  ;;  %v920_v34 = vadd.f32 %v3571_v54, %v3586_v1  ;;  %v926_v54 = vadd.f32 %v3575_v57, %v3586_v1  ;;  %v932_v57 = vadd.f32 %v3581_v60, %v3588_v2 }
 0x1b5   :  { %v1234_v8 = vpop.f32.mrb[16].mxu0  ;;  %v1352_v10 = vsel %vm1288_vm0, %v2435_v33, %v1320_v5  ;;  %v1375_v11 = vpack.c.bf16 %v1351_v7, %v1349_v6 }
 0x1b6   :  { %v2437_v13 = vadd.f32 %v1234_v8, %v896_v42  ;;  %v1236_v36 = vpop.f32.mrb[17].mxu0  ;;  %v1376_v35 = vpack.c.bf16 %v1352_v10, %v1350_v9 }
 0x1b7   :  { %v2439_v14 = vadd.f32 %v1236_v36, %v898_v43  ;;  %v1238_v15 = vpop.f32.mrb[18].mxu0 }
 0x1b8   :  { %v1321_v37 = vmul.f32 0.01, %v2437_v13  ;;  %v2441_v16 = vadd.f32 %v1238_v15, %v900_v12  ;;  %v1240_v45 = vpop.f32.mrb[19].mxu0  ;;  %1576 = vmatprep.mubr.bf16.mxu1 %v1376_v35  ;;  %vm1289_vm1 = vcmp.gt.f32.partialorder %v2437_v13, 0.0 }
 0x1b9   :  { %v1322_v17 = vmul.f32 0.01, %v2439_v14  ;;  %v2443_v18 = vadd.f32 %v1240_v45, %v902_v44  ;;  %1577 = vmatmul.mubr.bf16.gmra.mrb[44].mxu1 %v1375_v11  ;;  %vm1290_vm2 = vcmp.gt.f32.partialorder %v2439_v14, 0.0 }
 0x1ba   :  { %vm1291_vm3 = vcmp.gt.f32.partialorder %v2441_v16, 0.0  ;;  %v1323_v19 = vmul.f32 0.01, %v2441_v16  ;;  %v1353_v21 = vsel %vm1289_vm1, %v2437_v13, %v1321_v37 }
 0x1bb   :  { %vm1292_vm4 = vcmp.gt.f32.partialorder %v2443_v18, 0.0  ;;  %v1324_v20 = vmul.f32 0.01, %v2443_v18  ;;  %v1354_v23 = vsel %vm1290_vm2, %v2439_v14, %v1322_v17 }
 0x1bc   :  { %v1355_v22 = vsel %vm1291_vm3, %v2441_v16, %v1323_v19  ;;  %v930_v16 = vadd.f32 %v3579_v59, %v3586_v1 }
 0x1bd   :  { %v1244_v38 = vpop.f32.mrb[20].mxu0  ;;  %v1356_v39 = vsel %vm1292_vm4, %v2443_v18, %v1324_v20  ;;  %v1377_v24 = vpack.c.bf16 %v1355_v22, %v1353_v21 }
 0x1be   :  { %v2445_v26 = vadd.f32 %v1244_v38, %v906_v46  ;;  %v1246_v27 = vpop.f32.mrb[21].mxu0  ;;  %v1378_v28 = vpack.c.bf16 %v1356_v39, %v1354_v23 }
 0x1bf   :  { %v2447_v29 = vadd.f32 %v1246_v27, %v908_v47  ;;  %v1248_v30 = vpop.f32.mrb[22].mxu0  ;;  %v2704_v27 = vld [vmem:[%s3815_s5 + $0x28] sm:$0xff]  }
 0x1c0   :  { %v1325_v56 = vmul.f32 0.01, %v2445_v26  ;;  %v2449_v31 = vadd.f32 %v1248_v30, %v910_v25  ;;  %v1250_v49 = vpop.f32.mrb[23].mxu0  ;;  %1584 = vmatprep.mubr.bf16.mxu1 %v1378_v28  ;;  %vm1293_vm5 = vcmp.gt.f32.partialorder %v2445_v26, 0.0  ;;  %v2702_v25 = vld [vmem:[%s3815_s5 + $0x18] sm:$0xff]   ;;  %v2705_v28 = vld [vmem:[%s3815_s5 + $0x30] sm:$0xff]  }
 0x1c1   :  { %v1326_v61 = vmul.f32 0.01, %v2447_v29  ;;  %v2451_v32 = vadd.f32 %v1250_v49, %v912_v48  ;;  %1585 = vmatmul.mubr.bf16.gmra.mrb[48].mxu1 %v1377_v24  ;;  %vm1294_vm6 = vcmp.gt.f32.partialorder %v2447_v29, 0.0  ;;  %2378 = vmatprep.subr.bf16.mxu1 %v2702_v25  ;;  %v2706_v48 = vld [vmem:[%s3815_s5 + $0x38] sm:$0xff]   ;;  %v3673_v30 = vld [vmem:[%s3814_s4] ss:$0 sm:$0xff] }
 0x1c2   :  { %vm1295_vm7 = vcmp.gt.f32.partialorder %v2449_v31, 0.0  ;;  %v1327_v40 = vmul.f32 0.01, %v2449_v31  ;;  %v1357_v63 = vsel %vm1293_vm5, %v2445_v26, %v1325_v56  ;;  %2379 = vmatpush3.bf16.msra.mxu1 %v2702_v25  ;;  %v2703_v26 = vld [vmem:[%s3815_s5 + $0x20] sm:$0xff]  }
 0x1c3   :  { %vm1296_vm8 = vcmp.gt.f32.partialorder %v2451_v32, 0.0  ;;  %v1328_v62 = vmul.f32 0.01, %v2451_v32  ;;  %v1358_v41 = vsel %vm1294_vm6, %v2447_v29, %v1326_v61  ;;  %2380 = vmatprep.subr.bf16.mxu1 %v2703_v26 }
 0x1c4   :  { %v1359_v0 = vsel %vm1295_vm7, %v2449_v31, %v1327_v40 }
 0x1c5   :  { %v1254_v3 = vpop.f32.mrb[24].mxu0  ;;  %v1360_v4 = vsel %vm1296_vm8, %v2451_v32, %v1328_v62  ;;  %v1379_v33 = vpack.c.bf16 %v1359_v0, %v1357_v63 }
 0x1c6   :  { %v2453_v42 = vadd.f32 %v1254_v3, %v916_v50  ;;  %v1256_v5 = vpop.f32.mrb[25].mxu0  ;;  %v1380_v43 = vpack.c.bf16 %v1360_v4, %v1358_v41  ;;  %2381 = vmatpush3.bf16.msra.mxu1 %v2703_v26 }
 0x1c7   :  { %v2455_v6 = vadd.f32 %v1256_v5, %v918_v51  ;;  %v1258_v7 = vpop.f32.mrb[26].mxu0  ;;  %2382 = vmatprep.subr.bf16.mxu1 %v2704_v27 }
 0x1c8   :  { %v1329_v8 = vmul.f32 0.01, %v2453_v42  ;;  %v2457_v9 = vadd.f32 %v1258_v7, %v920_v34  ;;  %v1260_v53 = vpop.f32.mrb[27].mxu0  ;;  %1592 = vmatprep.mubr.bf16.mxu1 %v1380_v43  ;;  %vm1297_vm9 = vcmp.gt.f32.partialorder %v2453_v42, 0.0 }
 0x1c9   :  { %v1330_v10 = vmul.f32 0.01, %v2455_v6  ;;  %v2459_v11 = vadd.f32 %v1260_v53, %v922_v52  ;;  %1593 = vmatmul.mubr.bf16.gmra.mrb[52].mxu1 %v1379_v33  ;;  %vm1298_vm10 = vcmp.gt.f32.partialorder %v2455_v6, 0.0 }
 0x1ca   :  { %vm1299_vm11 = vcmp.gt.f32.partialorder %v2457_v9, 0.0  ;;  %v1331_v12 = vmul.f32 0.01, %v2457_v9  ;;  %v1361_v36 = vsel %vm1297_vm9, %v2453_v42, %v1329_v8  ;;  %2383 = vmatpush3.bf16.msra.mxu1 %v2704_v27 }
 0x1cb   :  { %vm1300_vm12 = vcmp.gt.f32.partialorder %v2459_v11, 0.0  ;;  %v1332_v13 = vmul.f32 0.01, %v2459_v11  ;;  %v1362_v14 = vsel %vm1298_vm10, %v2455_v6, %v1330_v10  ;;  %2384 = vmatprep.subr.bf16.mxu1 %v2705_v28 }
 0x1cc   :  { %v1363_v35 = vsel %vm1299_vm11, %v2457_v9, %v1331_v12 }
 0x1cd   :  { %v1264_v44 = vpop.f32.mrb[28].mxu0  ;;  %v1364_v15 = vsel %vm1300_vm12, %v2459_v11, %v1332_v13  ;;  %v1381_v37 = vpack.c.bf16 %v1363_v35, %v1361_v36 }
 0x1ce   :  { %v2461_v45 = vadd.f32 %v1264_v44, %v926_v54  ;;  %v1266_v17 = vpop.f32.mrb[29].mxu0  ;;  %v1382_v18 = vpack.c.bf16 %v1364_v15, %v1362_v14  ;;  %2385 = vmatpush3.bf16.msra.mxu1 %v2705_v28 }
 0x1cf   :  { %v2463_v19 = vadd.f32 %v1266_v17, %v928_v55  ;;  %v1268_v46 = vpop.f32.mrb[30].mxu0  ;;  %2386 = vmatprep.subr.bf16.mxu1 %v2706_v48 }
 0x1d0   :  { %v1333_v20 = vmul.f32 0.01, %v2461_v45  ;;  %v2465_v47 = vadd.f32 %v1268_v46, %v930_v16  ;;  %v1270_v58 = vpop.f32.mrb[31].mxu0  ;;  %1600 = vmatprep.mubr.bf16.mxu1 %v1382_v18  ;;  %vm1301_vm13 = vcmp.gt.f32.partialorder %v2461_v45, 0.0 }
 0x1d1   :  { %v1334_v21 = vmul.f32 0.01, %v2463_v19  ;;  %v2467_v22 = vadd.f32 %v1270_v58, %v932_v57  ;;  %1601 = vmatmul.mubr.bf16.gmra.mrb[56].mxu1 %v1381_v37  ;;  %vm1302_vm14 = vcmp.gt.f32.partialorder %v2463_v19, 0.0 }
 0x1d2   :  { %vm1303_vm15 = vcmp.gt.f32.partialorder %v2465_v47, 0.0  ;;  %v1335_v38 = vmul.f32 0.01, %v2465_v47  ;;  %v1365_v1 = vsel %vm1301_vm13, %v2461_v45, %v1333_v20  ;;  %2387 = vmatpush3.bf16.msra.mxu1 %v2706_v48 }
 0x1d3   :  { %vm1304_vm0 = vcmp.gt.f32.partialorder %v2467_v22, 0.0  ;;  %v1336_v59 = vmul.f32 0.01, %v2467_v22  ;;  %v1366_v39 = vsel %vm1302_vm14, %v2463_v19, %v1334_v21 }
 0x1d4   :  { %v1367_v23 = vsel %vm1303_vm15, %v2465_v47, %v1335_v38 }
 0x1d5   :  { %v1368_v24 = vsel %vm1304_vm0, %v2467_v22, %v1336_v59  ;;  %v1383_v60 = vpack.c.bf16 %v1367_v23, %v1365_v1 }
 0x1d6   :  { %v1384_v2 = vpack.c.bf16 %v1368_v24, %v1366_v39 }
 0x1d8   :  { %1608 = vmatprep.mubr.bf16.mxu1 %v1384_v2 }
 0x1d9   :  { %1609 = vmatmul.mubr.bf16.gmra.mrb[60].mxu1 %v1383_v60 }
 0x274   :  { %v2308_v29 = vpop.f32.mrb[32].mxu1 }
 0x275   :  { %v2309_v56 = vpop.f32.mrb[33].mxu1 }
 0x276   :  { %v2310_v31 = vadd.f32 %v2309_v56, %v2308_v29  ;;  %v2311_v49 = vpop.f32.mrb[34].mxu1 }
 0x277   :  { %v2312_v61 = vpop.f32.mrb[35].mxu1 }
 0x278   :  { %v1555_v32 = vadd.f32 %v2310_v31, %v3673_v30  ;;  %v2313_v40 = vadd.f32 %v2312_v61, %v2311_v49 }
 0x27a   :  { %v1633_v50 = vmul.f32 0.01, %v1555_v32  ;;  %v1558_v62 = vadd.f32 %v2313_v40, %v3673_v30  ;;  %vm1617_vm1 = vcmp.gt.f32.partialorder %v1555_v32, 0.0 }
 0x27c   :  { %vm1618_vm2 = vcmp.gt.f32.partialorder %v1558_v62, 0.0  ;;  %v1634_v51 = vmul.f32 0.01, %v1558_v62  ;;  %v2314_v63 = vpop.f32.mrb[36].mxu1  ;;  %v1649_v4 = vsel %vm1617_vm1, %v1555_v32, %v1633_v50 }
 0x27d   :  { %v2315_v0 = vpop.f32.mrb[37].mxu1 }
 0x27e   :  { %v2316_v3 = vadd.f32 %v2315_v0, %v2314_v63  ;;  %v2317_v41 = vpop.f32.mrb[38].mxu1  ;;  %v1650_v33 = vsel %vm1618_vm2, %v1558_v62, %v1634_v51 }
 0x27f   :  { %v2318_v34 = vpop.f32.mrb[39].mxu1  ;;  %v1665_v42 = vpack.c.bf16 %v1650_v33, %v1649_v4 }
 0x280   :  { %v1563_v5 = vadd.f32 %v2316_v3, %v3673_v30  ;;  %v2319_v43 = vadd.f32 %v2318_v34, %v2317_v41 }
 0x281   :  { %2388 = vmatprep.mubr.bf16.mxu1 %v1665_v42 }
 0x282   :  { %v1635_v52 = vmul.f32 0.01, %v1563_v5  ;;  %v1566_v6 = vadd.f32 %v2319_v43, %v3673_v30  ;;  %vm1619_vm3 = vcmp.gt.f32.partialorder %v1563_v5, 0.0 }
 0x284   :  { %vm1620_vm4 = vcmp.gt.f32.partialorder %v1566_v6, 0.0  ;;  %v1636_v7 = vmul.f32 0.01, %v1566_v6  ;;  %v2320_v8 = vpop.f32.mrb[40].mxu1  ;;  %v1651_v53 = vsel %vm1619_vm3, %v1563_v5, %v1635_v52 }
 0x285   :  { %v2321_v9 = vpop.f32.mrb[41].mxu1 }
 0x286   :  { %v1652_v10 = vsel %vm1620_vm4, %v1566_v6, %v1636_v7  ;;  %v2322_v11 = vadd.f32 %v2321_v9, %v2320_v8  ;;  %v2323_v12 = vpop.f32.mrb[42].mxu1 }
 0x287   :  { %v1666_v54 = vpack.c.bf16 %v1652_v10, %v1651_v53  ;;  %v2324_v13 = vpop.f32.mrb[43].mxu1 }
 0x288   :  { %v1571_v55 = vadd.f32 %v2322_v11, %v3673_v30  ;;  %v2325_v36 = vadd.f32 %v2324_v13, %v2323_v12 }
 0x289   :  { %2389 = vmatmul.mubr.bf16.vlgmr.msra.gmra.mrb[64].mxu1 %v1666_v54 }
 0x28a   :  { %v1637_v35 = vmul.f32 0.01, %v1571_v55  ;;  %v1574_v44 = vadd.f32 %v2325_v36, %v3673_v30  ;;  %vm1621_vm5 = vcmp.gt.f32.partialorder %v1571_v55, 0.0 }
 0x28c   :  { %vm1622_vm6 = vcmp.gt.f32.partialorder %v1574_v44, 0.0  ;;  %v1638_v14 = vmul.f32 0.01, %v1574_v44  ;;  %v2326_v15 = vpop.f32.mrb[44].mxu1  ;;  %v1653_v17 = vsel %vm1621_vm5, %v1571_v55, %v1637_v35 }
 0x28d   :  { %v2327_v37 = vpop.f32.mrb[45].mxu1 }
 0x28e   :  { %v2328_v16 = vadd.f32 %v2327_v37, %v2326_v15  ;;  %v2329_v45 = vpop.f32.mrb[46].mxu1  ;;  %v1654_v18 = vsel %vm1622_vm6, %v1574_v44, %v1638_v14 }
 0x28f   :  { %v2330_v57 = vpop.f32.mrb[47].mxu1  ;;  %v1667_v19 = vpack.c.bf16 %v1654_v18, %v1653_v17  ;;  %v2204_v18 = vld [vmem:[%s3816_s6] ss:$0 sm:$0xff]  ;;  %s2796_s6 = smov [#allocation2]  }
 0x290   :  { %v1579_v46 = vadd.f32 %v2328_v16, %v3673_v30  ;;  %v2331_v20 = vadd.f32 %v2330_v57, %v2329_v45  ;;  %s2070_s26 = sshll.u32 %s2796_s6, 4  ;;  %s2071_s26 = int_to_ptr.vmem [resolvable:$true] %s2070_s26 }
 0x291   :  { %2392 = vmatprep.mubr.bf16.mxu1 %v1667_v19  ;;  %s2771_s27 = scalar_lea.vmem %s2071_s26, 1024  ;;  %p2776_p1 = scmp.lt.s32.totalorder %s2071_s26, %s2071_s26 }
 0x292   :  { %v1639_v47 = vmul.f32 0.01, %v1579_v46  ;;  %v1582_v58 = vadd.f32 %v2331_v20, %v3673_v30  ;;  %vm1623_vm7 = vcmp.gt.f32.partialorder %v1579_v46, 0.0  ;;  %p2772_p0 = scmp.ne.s32.totalorder %s2071_s26, %s2771_s27  ;;  %p2777_p2 = scmp.lt.s32.totalorder %s2771_s27, %s2771_s27 }
 0x294   :  { %vm1624_vm8 = vcmp.gt.f32.partialorder %v1582_v58, 0.0  ;;  %v1640_v21 = vmul.f32 0.01, %v1582_v58  ;;  %v2332_v22 = vpop.f32.mrb[48].mxu1  ;;  %v1655_v23 = vsel %vm1623_vm7, %v1579_v46, %v1639_v47  ;;  %p2778_p3 = por %p2777_p2, %p2776_p1 }
 0x295   :  { %v2333_v38 = vpop.f32.mrb[49].mxu1 }
 0x296   :  { %v2334_v59 = vadd.f32 %v2333_v38, %v2332_v22  ;;  %v2335_v1 = vpop.f32.mrb[50].mxu1  ;;  %v1656_v39 = vsel %vm1624_vm8, %v1582_v58, %v1640_v21  ;;  %p2779_p4 = pnand %p2778_p3, %p2772_p0 }
 0x297   :  { %v2336_v24 = vpop.f32.mrb[51].mxu1  ;;  %v1668_v60 = vpack.c.bf16 %v1656_v39, %v1655_v23 }
 0x298   :  { %v1587_v2 = vadd.f32 %v2334_v59, %v3673_v30  ;;  %v2337_v25 = vadd.f32 %v2336_v24, %v2335_v1 }
 0x299   :  { %2393 = vmatmul.mubr.bf16.gmra.mrb[68].mxu1 %v1668_v60 }
 0x29a   :  { %v1641_v26 = vmul.f32 0.01, %v1587_v2  ;;  %v1590_v27 = vadd.f32 %v2337_v25, %v3673_v30  ;;  %vm1625_vm9 = vcmp.gt.f32.partialorder %v1587_v2, 0.0 }
 0x29c   :  { %vm1626_vm10 = vcmp.gt.f32.partialorder %v1590_v27, 0.0  ;;  %v1642_v28 = vmul.f32 0.01, %v1590_v27  ;;  %v2338_v48 = vpop.f32.mrb[52].mxu1  ;;  %v1657_v49 = vsel %vm1625_vm9, %v1587_v2, %v1641_v26 }
 0x29d   :  { %v2339_v29 = vpop.f32.mrb[53].mxu1 }
 0x29e   :  { %v2340_v56 = vadd.f32 %v2339_v29, %v2338_v48  ;;  %v2341_v31 = vpop.f32.mrb[54].mxu1  ;;  %v1658_v61 = vsel %vm1626_vm10, %v1590_v27, %v1642_v28 }
 0x29f   :  { %v2342_v32 = vpop.f32.mrb[55].mxu1  ;;  %v1669_v40 = vpack.c.bf16 %v1658_v61, %v1657_v49 }
 0x2a0   :  { %v1595_v50 = vadd.f32 %v2340_v56, %v3673_v30  ;;  %v2343_v62 = vadd.f32 %v2342_v32, %v2341_v31 }
 0x2a1   :  { %2396 = vmatprep.mubr.bf16.mxu1 %v1669_v40 }
 0x2a2   :  { %v1643_v51 = vmul.f32 0.01, %v1595_v50  ;;  %v1598_v63 = vadd.f32 %v2343_v62, %v3673_v30  ;;  %vm1627_vm11 = vcmp.gt.f32.partialorder %v1595_v50, 0.0 }
 0x2a4   :  { %vm1628_vm12 = vcmp.gt.f32.partialorder %v1598_v63, 0.0  ;;  %v1644_v0 = vmul.f32 0.01, %v1598_v63  ;;  %v2344_v3 = vpop.f32.mrb[56].mxu1  ;;  %v1659_v34 = vsel %vm1627_vm11, %v1595_v50, %v1643_v51 }
 0x2a5   :  { %v2345_v41 = vpop.f32.mrb[57].mxu1 }
 0x2a6   :  { %v2346_v4 = vadd.f32 %v2345_v41, %v2344_v3  ;;  %v2347_v33 = vpop.f32.mrb[58].mxu1  ;;  %v1660_v42 = vsel %vm1628_vm12, %v1598_v63, %v1644_v0 }
 0x2a7   :  { %v2348_v5 = vpop.f32.mrb[59].mxu1  ;;  %v1670_v43 = vpack.c.bf16 %v1660_v42, %v1659_v34 }
 0x2a8   :  { %v1603_v52 = vadd.f32 %v2346_v4, %v3673_v30  ;;  %v2349_v6 = vadd.f32 %v2348_v5, %v2347_v33 }
 0x2a9   :  { %2397 = vmatmul.mubr.bf16.gmra.mrb[72].mxu1 %v1670_v43 }
 0x2aa   :  { %v1645_v7 = vmul.f32 0.01, %v1603_v52  ;;  %v1606_v8 = vadd.f32 %v2349_v6, %v3673_v30  ;;  %vm1629_vm13 = vcmp.gt.f32.partialorder %v1603_v52, 0.0 }
 0x2ac   :  { %vm1630_vm14 = vcmp.gt.f32.partialorder %v1606_v8, 0.0  ;;  %v1646_v9 = vmul.f32 0.01, %v1606_v8  ;;  %v2350_v53 = vpop.f32.mrb[60].mxu1  ;;  %v1661_v54 = vsel %vm1629_vm13, %v1603_v52, %v1645_v7 }
 0x2ad   :  { %v2351_v10 = vpop.f32.mrb[61].mxu1 }
 0x2ae   :  { %v2352_v11 = vadd.f32 %v2351_v10, %v2350_v53  ;;  %v2353_v12 = vpop.f32.mrb[62].mxu1  ;;  %v1662_v13 = vsel %vm1630_vm14, %v1606_v8, %v1646_v9 }
 0x2af   :  { %v2354_v55 = vpop.f32.mrb[63].mxu1  ;;  %v1671_v36 = vpack.c.bf16 %v1662_v13, %v1661_v54 }
 0x2b0   :  { %v1611_v35 = vadd.f32 %v2352_v11, %v3673_v30  ;;  %v2355_v44 = vadd.f32 %v2354_v55, %v2353_v12 }
 0x2b1   :  { %2400 = vmatprep.mubr.bf16.mxu1 %v1671_v36 }
 0x2b2   :  { %v1647_v14 = vmul.f32 0.01, %v1611_v35  ;;  %v1614_v15 = vadd.f32 %v2355_v44, %v3673_v30  ;;  %vm1631_vm15 = vcmp.gt.f32.partialorder %v1611_v35, 0.0 }
 0x2b4   :  { %vm1632_vm0 = vcmp.gt.f32.partialorder %v1614_v15, 0.0  ;;  %v1648_v37 = vmul.f32 0.01, %v1614_v15  ;;  %v1663_v16 = vsel %vm1631_vm15, %v1611_v35, %v1647_v14 }
 0x2b6   :  { %v1664_v45 = vsel %vm1632_vm0, %v1614_v15, %v1648_v37 }
 0x2b7   :  { %v1672_v17 = vpack.c.bf16 %v1664_v45, %v1663_v16 }
 0x2b9   :  { %2401 = vmatmul.mubr.bf16.gmra.mrb[76].mxu1 %v1672_v17 }
 0x35c   :  { %v2390_v57 = vpop.f32.mrb[64].mxu1 }
 0x35d   :  { %v1787_v19 = vadd.f32 %v2390_v57, %v2204_v18  ;;  %v1778_v46 = vpop.f32.mrb[65].mxu1 }
 0x35e   :  { %v1779_v20 = vadd.f32 %v2204_v18, %v1778_v46  ;;  %v2391_v47 = vpop.f32.mrb[66].mxu1 }
 0x35f   :  { %1845 = vmax.xlane.f32.xlu1 %v1787_v19  ;;  %v1781_v58 = vpop.f32.mrb[67].mxu1  ;;  %v1790_v30 = vadd.f32 %v2391_v47, %v2204_v18 }
 0x360   :  { %1841 = vmax.xlane.f32.xlu0 %v1779_v20  ;;  %v1782_v21 = vadd.f32 %v2204_v18, %v1781_v58 }
 0x363   :  { %1847 = vmax.xlane.f32.xlu1 %v1790_v30 }
 0x364   :  { %1843 = vmax.xlane.f32.xlu0 %v1782_v21 }
 0x36c   :  { %v2394_v22 = vpop.f32.mrb[68].mxu1 }
 0x36d   :  { %v1803_v38 = vadd.f32 %v2394_v22, %v2204_v18  ;;  %v1794_v59 = vpop.f32.mrb[69].mxu1 }
 0x36e   :  { %v2395_v1 = vpop.f32.mrb[70].mxu1  ;;  %v3694_v24 = vadd.f32 %v2204_v18, %v1794_v59 }
 0x36f   :  { %v1806_v23 = vadd.f32 %v2395_v1, %v2204_v18  ;;  %v1797_v39 = vpop.f32.mrb[71].mxu1  ;;  %1853 = vmax.xlane.f32.xlu0 %v1803_v38 }
 0x370   :  { %v3696_v60 = vadd.f32 %v2204_v18, %v1797_v39 }
 0x371   :  { %1855 = vmax.xlane.f32.xlu1 %v1806_v23 }
 0x373   :  { %1849 = vmax.xlane.f32.xlu0 %v3694_v24 }
 0x375   :  { %1851 = vmax.xlane.f32.xlu1 %v3696_v60 }
 0x37c   :  { %v2398_v2 = vpop.f32.mrb[72].mxu1 }
 0x37d   :  { %v3700_v25 = vadd.f32 %v2398_v2, %v2204_v18  ;;  %v1810_v26 = vpop.f32.mrb[73].mxu1 }
 0x37e   :  { %v2399_v27 = vpop.f32.mrb[74].mxu1  ;;  %v3705_v29 = vadd.f32 %v2204_v18, %v1810_v26 }
 0x37f   :  { %v3702_v28 = vadd.f32 %v2399_v27, %v2204_v18  ;;  %v1813_v48 = vpop.f32.mrb[75].mxu1  ;;  %1861 = vmax.xlane.f32.xlu0 %v3700_v25 }
 0x380   :  { %v3708_v56 = vadd.f32 %v2204_v18, %v1813_v48 }
 0x381   :  { %1863 = vmax.xlane.f32.xlu1 %v3702_v28 }
 0x383   :  { %1857 = vmax.xlane.f32.xlu0 %v3705_v29 }
 0x385   :  { %1859 = vmax.xlane.f32.xlu1 %v3708_v56 }
 0x38c   :  { %v2402_v31 = vpop.f32.mrb[76].mxu1 }
 0x38d   :  { %v1826_v49 = vpop.f32.mrb[77].mxu1  ;;  %v3717_v62 = vadd.f32 %v2402_v31, %v2204_v18 }
 0x38e   :  { %v3712_v61 = vadd.f32 %v2204_v18, %v1826_v49  ;;  %v2403_v32 = vpop.f32.mrb[78].mxu1 }
 0x38f   :  { %v1829_v40 = vpop.f32.mrb[79].mxu1  ;;  %v3720_v51 = vadd.f32 %v2403_v32, %v2204_v18 }
 0x390   :  { %v3714_v50 = vadd.f32 %v2204_v18, %v1829_v40  ;;  %1865 = vmax.xlane.f32.xlu0 %v3712_v61 }
 0x392   :  { %1867 = vmax.xlane.f32.xlu1 %v3714_v50 }
 0x394   :  { %1869 = vmax.xlane.f32.xlu0 %v3717_v62 }
 0x396   :  { %1871 = vmax.xlane.f32.xlu1 %v3720_v51 }
 0x3ec   :  { %v1846_v63 = vpop.xlane.xlu1 %1845 }
 0x3ed   :  { %v1875_v0 = vsub.f32 %v1787_v19, %v1846_v63  ;;  %v1842_v3 = vpop.xlane.xlu0 %1841 }
 0x3ee   :  { %v1873_v41 = vsub.f32 %v1779_v20, %v1842_v3 }
 0x3ef   :  { %v1893_v4 = vmul.f32 1.442695, %v1875_v0 }
 0x3f0   :  { %v1889_v33 = vmul.f32 1.442695, %v1873_v41  ;;  %v1848_v34 = vpop.xlane.xlu1 %1847 }
 0x3f1   :  { %2707 = vpow2.f32 %v1893_v4  ;;  %v1876_v42 = vsub.f32 %v1790_v30, %v1848_v34  ;;  %v1844_v5 = vpop.xlane.xlu0 %1843 }
 0x3f2   :  { %v1874_v43 = vsub.f32 %v1782_v21, %v1844_v5  ;;  %2709 = vpow2.f32 %v1889_v33 }
 0x3f3   :  { %v1895_v52 = vmul.f32 1.442695, %v1876_v42 }
 0x3f4   :  { %v1891_v6 = vmul.f32 1.442695, %v1874_v43 }
 0x3f5   :  { %2711 = vpow2.f32 %v1895_v52 }
 0x3f6   :  { %2713 = vpow2.f32 %v1891_v6 }
 0x3fb   :  { %v3724_v7 = vpop.eup %2707 }
 0x3fc   :  { %1925 = vadd.xlane.f32.xlu0 %v3724_v7  ;;  %v1854_v8 = vpop.xlane.xlu0 %1853  ;;  %v3727_v53 = vpop.eup %2709 }
 0x3fd   :  { %v1879_v9 = vsub.f32 %v1803_v38, %v1854_v8 }
 0x3fe   :  { %v1856_v10 = vpop.xlane.xlu1 %1855 }
 0x3ff   :  { %v3729_v11 = vpop.eup %2711  ;;  %v1901_v12 = vmul.f32 1.442695, %v1879_v9  ;;  %v1880_v54 = vsub.f32 %v1806_v23, %v1856_v10 }
 0x400   :  { %1927 = vadd.xlane.f32.xlu1 %v3729_v11  ;;  %1921 = vadd.xlane.f32.xlu0 %v3727_v53  ;;  %v1850_v13 = vpop.xlane.xlu0 %1849  ;;  %v3734_v44 = vpop.eup %2713 }
 0x401   :  { %2715 = vpow2.f32 %v1901_v12  ;;  %v1903_v55 = vmul.f32 1.442695, %v1880_v54  ;;  %v1877_v36 = vsub.f32 %v3694_v24, %v1850_v13 }
 0x402   :  { %v1852_v35 = vpop.xlane.xlu1 %1851 }
 0x403   :  { %2717 = vpow2.f32 %v1903_v55  ;;  %v1897_v14 = vmul.f32 1.442695, %v1877_v36  ;;  %v1878_v15 = vsub.f32 %v3696_v60, %v1852_v35 }
 0x404   :  { %1923 = vadd.xlane.f32.xlu1 %v3734_v44 }
 0x405   :  { %2719 = vpow2.f32 %v1897_v14  ;;  %v1899_v37 = vmul.f32 1.442695, %v1878_v15 }
 0x407   :  { %2721 = vpow2.f32 %v1899_v37 }
 0x40b   :  { %v3738_v16 = vpop.eup %2715 }
 0x40c   :  { %1933 = vadd.xlane.f32.xlu0 %v3738_v16  ;;  %v1862_v45 = vpop.xlane.xlu0 %1861 }
 0x40d   :  { %v3741_v17 = vpop.eup %2717  ;;  %v1883_v18 = vsub.f32 %v3700_v25, %v1862_v45 }
 0x40e   :  { %v1864_v57 = vpop.xlane.xlu1 %1863  ;;  %1935 = vadd.xlane.f32.xlu1 %v3741_v17 }
 0x40f   :  { %v3745_v19 = vpop.eup %2719  ;;  %v1909_v46 = vmul.f32 1.442695, %v1883_v18  ;;  %v1884_v20 = vsub.f32 %v3702_v28, %v1864_v57 }
 0x410   :  { %1929 = vadd.xlane.f32.xlu0 %v3745_v19  ;;  %v1858_v47 = vpop.xlane.xlu0 %1857 }
 0x411   :  { %v3749_v58 = vpop.eup %2721  ;;  %2723 = vpow2.f32 %v1909_v46  ;;  %v1911_v30 = vmul.f32 1.442695, %v1884_v20  ;;  %v1881_v21 = vsub.f32 %v3705_v29, %v1858_v47 }
 0x412   :  { %v1860_v22 = vpop.xlane.xlu1 %1859  ;;  %1931 = vadd.xlane.f32.xlu1 %v3749_v58 }
 0x413   :  { %2725 = vpow2.f32 %v1911_v30  ;;  %v1905_v38 = vmul.f32 1.442695, %v1881_v21  ;;  %v1882_v59 = vsub.f32 %v3708_v56, %v1860_v22 }
 0x415   :  { %2727 = vpow2.f32 %v1905_v38  ;;  %v1907_v1 = vmul.f32 1.442695, %v1882_v59 }
 0x417   :  { %2729 = vpow2.f32 %v1907_v1 }
 0x41b   :  { %v3754_v23 = vpop.eup %2723 }
 0x41c   :  { %1941 = vadd.xlane.f32.xlu0 %v3754_v23 }
 0x41d   :  { %v3757_v39 = vpop.eup %2725  ;;  %v1866_v24 = vpop.xlane.xlu0 %1865 }
 0x41e   :  { %v1885_v60 = vsub.f32 %v3712_v61, %v1866_v24  ;;  %1943 = vadd.xlane.f32.xlu1 %v3757_v39 }
 0x41f   :  { %v3761_v2 = vpop.eup %2727  ;;  %v1868_v25 = vpop.xlane.xlu1 %1867 }
 0x420   :  { %v1913_v26 = vmul.f32 1.442695, %v1885_v60  ;;  %v1886_v27 = vsub.f32 %v3714_v50, %v1868_v25  ;;  %1937 = vadd.xlane.f32.xlu0 %v3761_v2 }
 0x421   :  { %v3765_v28 = vpop.eup %2729  ;;  %v1870_v48 = vpop.xlane.xlu0 %1869 }
 0x422   :  { %2731 = vpow2.f32 %v1913_v26  ;;  %v1915_v29 = vmul.f32 1.442695, %v1886_v27  ;;  %v1887_v56 = vsub.f32 %v3717_v62, %v1870_v48  ;;  %1939 = vadd.xlane.f32.xlu1 %v3765_v28 }
 0x423   :  { %v1872_v31 = vpop.xlane.xlu1 %1871 }
 0x424   :  { %2733 = vpow2.f32 %v1915_v29  ;;  %v1917_v49 = vmul.f32 1.442695, %v1887_v56  ;;  %v1888_v61 = vsub.f32 %v3720_v51, %v1872_v31 }
 0x426   :  { %2735 = vpow2.f32 %v1917_v49  ;;  %v1919_v32 = vmul.f32 1.442695, %v1888_v61 }
 0x428   :  { %2737 = vpow2.f32 %v1919_v32 }
 0x42c   :  { %v3770_v40 = vpop.eup %2731 }
 0x42d   :  { %1945 = vadd.xlane.f32.xlu0 %v3770_v40 }
 0x42e   :  { %v3773_v50 = vpop.eup %2733 }
 0x42f   :  { %1947 = vadd.xlane.f32.xlu1 %v3773_v50 }
 0x430   :  { %v3776_v63 = vpop.eup %2735 }
 0x431   :  { %1949 = vadd.xlane.f32.xlu0 %v3776_v63 }
 0x432   :  { %v3779_v62 = vpop.eup %2737 }
 0x433   :  { %1951 = vadd.xlane.f32.xlu1 %v3779_v62 }
 0x489   :  { %v1926_v51 = vpop.xlane.xlu0 %1925 }
 0x48a   :  { %2739 = vrcp.f32 %v1926_v51 }
 0x48d   :  { %v1928_v0 = vpop.xlane.xlu1 %1927  ;;  %v1922_v3 = vpop.xlane.xlu0 %1921 }
 0x48e   :  { %2741 = vrcp.f32 %v1928_v0 }
 0x48f   :  { %2743 = vrcp.f32 %v1922_v3 }
 0x491   :  { %v1924_v41 = vpop.xlane.xlu1 %1923 }
 0x492   :  { %2745 = vrcp.f32 %v1924_v41 }
 0x494   :  { %v2740_v4 = vpop.eup %2739 }
 0x495   :  { %v1971_v34 = vmul.f32 %v2740_v4, %v3724_v7 }
 0x498   :  { %v2742_v33 = vpop.eup %2741 }
 0x499   :  { %v1972_v42 = vmul.f32 %v2742_v33, %v3729_v11  ;;  %v1934_v5 = vpop.xlane.xlu0 %1933  ;;  %v2744_v43 = vpop.eup %2743 }
 0x49a   :  { %2747 = vrcp.f32 %v1934_v5  ;;  %v1969_v9 = vmul.f32 %v2744_v43, %v3727_v53 }
 0x49b   :  { %v2253_v52 = vpack.c.bf16 %v1972_v42, %v1971_v34  ;;  %v1936_v6 = vpop.xlane.xlu1 %1935 }
 0x49c   :  { %v2746_v8 = vpop.eup %2745  ;;  %2749 = vrcp.f32 %v1936_v6 }
 0x49d   :  { %2285 = vst [vmem:[#allocation2 + $0x8] sm:$0xff] %v2253_v52   ;;  %v1970_v10 = vmul.f32 %v2746_v8, %v3734_v44  ;;  %v1930_v12 = vpop.xlane.xlu0 %1929 }
 0x49e   :  { %2751 = vrcp.f32 %v1930_v12 }
 0x49f   :  { %v2248_v54 = vpack.c.bf16 %v1970_v10, %v1969_v9  ;;  %v1932_v13 = vpop.xlane.xlu1 %1931 }
 0x4a0   :  { %2753 = vrcp.f32 %v1932_v13 }
 0x4a1   :  { %2249 = vst [vmem:[#allocation2] sm:$0xff] %v2248_v54  }
 0x4a4   :  { %v2748_v7 = vpop.eup %2747 }
 0x4a5   :  { %v1975_v55 = vmul.f32 %v2748_v7, %v3738_v16 }
 0x4a6   :  { %v2750_v11 = vpop.eup %2749 }
 0x4a7   :  { %v1976_v36 = vmul.f32 %v2750_v11, %v3741_v17 }
 0x4a8   :  { %v2752_v35 = vpop.eup %2751 }
 0x4a9   :  { %v2263_v14 = vpack.c.bf16 %v1976_v36, %v1975_v55  ;;  %v1942_v15 = vpop.xlane.xlu0 %1941  ;;  %v1973_v53 = vmul.f32 %v2752_v35, %v3745_v19 }
 0x4aa   :  { %v2754_v37 = vpop.eup %2753  ;;  %2755 = vrcp.f32 %v1942_v15 }
 0x4ab   :  { %2287 = vst [vmem:[#allocation2 + $0x18] sm:$0xff] %v2263_v14   ;;  %v1974_v44 = vmul.f32 %v2754_v37, %v3749_v58  ;;  %v1944_v45 = vpop.xlane.xlu1 %1943 }
 0x4ac   :  { %2757 = vrcp.f32 %v1944_v45 }
 0x4ad   :  { %v2258_v18 = vpack.c.bf16 %v1974_v44, %v1973_v53  ;;  %v1938_v57 = vpop.xlane.xlu0 %1937 }
 0x4ae   :  { %2759 = vrcp.f32 %v1938_v57 }
 0x4af   :  { %2286 = vst [vmem:[#allocation2 + $0x10] sm:$0xff] %v2258_v18   ;;  %v1940_v46 = vpop.xlane.xlu1 %1939 }
 0x4b0   :  { %2761 = vrcp.f32 %v1940_v46 }
 0x4b4   :  { %v2756_v16 = vpop.eup %2755 }
 0x4b5   :  { %v1979_v20 = vmul.f32 %v2756_v16, %v3754_v23 }
 0x4b6   :  { %v2758_v17 = vpop.eup %2757 }
 0x4b7   :  { %v1980_v47 = vmul.f32 %v2758_v17, %v3757_v39 }
 0x4b8   :  { %v2760_v30 = vpop.eup %2759 }
 0x4b9   :  { %v2273_v21 = vpack.c.bf16 %v1980_v47, %v1979_v20  ;;  %v1977_v58 = vmul.f32 %v2760_v30, %v3761_v2 }
 0x4ba   :  { %v2762_v22 = vpop.eup %2761  ;;  %v1946_v19 = vpop.xlane.xlu0 %1945 }
 0x4bb   :  { %2289 = vst [vmem:[#allocation2 + $0x28] sm:$0xff] %v2273_v21   ;;  %v1978_v38 = vmul.f32 %v2762_v22, %v3765_v28  ;;  %2763 = vrcp.f32 %v1946_v19 }
 0x4bc   :  { %v1948_v59 = vpop.xlane.xlu1 %1947 }
 0x4bd   :  { %v2268_v1 = vpack.c.bf16 %v1978_v38, %v1977_v58  ;;  %2765 = vrcp.f32 %v1948_v59 }
 0x4be   :  { %v1950_v24 = vpop.xlane.xlu0 %1949 }
 0x4bf   :  { %2288 = vst [vmem:[#allocation2 + $0x20] sm:$0xff] %v2268_v1   ;;  %2767 = vrcp.f32 %v1950_v24 }
 0x4c0   :  { %v1952_v60 = vpop.xlane.xlu1 %1951 }
 0x4c1   :  { %2769 = vrcp.f32 %v1952_v60 }
 0x4c5   :  { %v2764_v23 = vpop.eup %2763 }
 0x4c6   :  { %v1981_v25 = vmul.f32 %v2764_v23, %v3770_v40 }
 0x4c7   :  { %v2766_v39 = vpop.eup %2765 }
 0x4c8   :  { %v1982_v26 = vmul.f32 %v2766_v39, %v3773_v50 }
 0x4c9   :  { %v2768_v27 = vpop.eup %2767 }
 0x4ca   :  { %v2278_v48 = vpack.c.bf16 %v1982_v26, %v1981_v25  ;;  %v1983_v28 = vmul.f32 %v2768_v27, %v3776_v63 }
 0x4cb   :  { %v2770_v2 = vpop.eup %2769 }
 0x4cc   :  { %2290 = vst [vmem:[#allocation2 + $0x30] sm:$0xff] %v2278_v48   ;;  %v1984_v29 = vmul.f32 %v2770_v2, %v3779_v62 }
 0x4ce   :  { %v2283_v56 = vpack.c.bf16 %v1984_v29, %v1983_v28 }
 0x4d0   :  { %2291 = vst [vmem:[#allocation2 + $0x38] sm:$0xff] %v2283_v56  }
 0x4d1   :  { %2782 = shalt.err (!%p2779_p4)
}
 0x4d2   :  { %s2783_s30 = scalar_lea.hbm %s3817_s7, 1024 }
 0x4d3   :  { %p2784_p5 = scmp.ne.s32.totalorder %s3817_s7, %s2783_s30  ;;  %p2787_p6 = scmp.lt.u32.totalorder %s2783_s30, %s3817_s7 }
 0x4d5   :  { %p2789_p7 = pnand %p2787_p6, %p2784_p5 }
 0x4d7   :  { %2792 = shalt.err (!%p2789_p7)
}
 0x4d8   :  { %s2797_s3 = smov 64   ;;  %s2798_s11 = smov 4  }
 0x4d9   :  { %2076 = dma.vmem_to_hbm [thread:$0]  %s2071_s26, 1024, %s3817_s7, [#allocation3], %s2797_s3, %s2797_s3, %s2798_s11  }
 0x4da   :  { %2793 = dma.done.wait [#allocation3], 1024  }
 0x4db   :  { %2794 = vsyncadd [#allocation3], 4294966272 }
 0x4dc   :  { %2080 = vsyncpa [#allocation3], 1 }

</bundles_post_ra>
